<compile_context>
chip_gen: v6e
topology: v6e:2x2x1
jax: 0.10.0
libtpu: 0.0.40
codegen_flags: <defaults>
</compile_context>

<pallas_src>
import jax
import jax.numpy as jnp
import numpy as np
from jax import lax
from jax.experimental import pallas as pl
from jax.experimental.pallas import tpu as pltpu

# ----------------------------- model geometry -------------------------------
IMG_H = IMG_W = 28
IMG_PIX = IMG_H * IMG_W          # 784 raw pixels per sample
PIX_PAD = 896                    # 7*128 lane-aligned input-slab width
ONE_PIX = IMG_PIX                # slab column holding a constant 1.0
K = 5                            # conv kernel size
STRIDE = 3
OH = OW = 8                      # (28 - 5)//3 + 1
HW = OH * OW                     # 64 conv output positions
C_PAD = 8                        # conv channels padded 5 -> 8
CONV_LANES = HW * C_PAD          # 512 conv output lanes
ONE_CONV_LANE = 7                # hw=0 pad-channel lane kept at constant 1.0
F1_OUT = 100
F1_PAD = 128
ONE_FC1_LANE = 127               # padded fc1 lane kept at constant 1.0
F2_OUT = 10
F2_PAD = 128

_MAX_BLOCK_B = 512               # batch-tile cap (safe for v7x's 64 MiB VMEM)


def _round_up(x, m):
    return (x + m - 1) // m * m


# ----------------------------- Pallas kernel --------------------------------

def _cryptonet_kernel(x_ref, wc_ref, w1_ref, w2_ref, o_ref):
    # Fused im2col + conv + conv-bias: (TB, 896) @ (896, 512).
    c = jnp.dot(x_ref[...], wc_ref[...], preferred_element_type=jnp.float32)
    c = c * c                                              # square activation
    # fc1 (+ bias via the constant-1 conv lane): (TB, 512) @ (512, 128).
    h = jnp.dot(c.astype(w1_ref.dtype), w1_ref[...],
                preferred_element_type=jnp.float32)
    h = h * h                                              # square activation
    # fc2 (+ bias via the constant-1 fc1 lane): (TB, 128) @ (128, 128).
    o_ref[...] = jnp.dot(h.astype(w2_ref.dtype), w2_ref[...],
                         preferred_element_type=jnp.float32)


# --------------------- one-time weight repacking (host) ---------------------

def pack_params(conv_w, conv_b, fc1_w, fc1_b, fc2_w, fc2_b, dtype=jnp.float32):
    """Fold im2col, conv, fc1, fc2 and ALL biases into three matmul weights.

    Host-side, runs once at model load.  dtype=jnp.bfloat16 is the deployment
    path (halves the HBM image/weight stream, native-rate MXU); accumulation
    stays f32 in the kernel either way.

      wc (896, 512): slab column -> conv lane hw*8 + c (hw = oh*8+ow, c padded
                     5->8).  Row 784 (driven by the slab's constant-1 lane)
                     carries the conv bias; its column 7 is 1.0 so conv lane 7
                     is a constant-1 generator for the fc biases.
      w1 (512, 128): conv lane -> fc1 feature (100 padded to 128).  Row 7
                     carries the fc1 bias; w1[7,127]=1 keeps a 1 alive through
                     the second squaring.
      w2 (128, 128): fc1 feature -> logits (10 padded to 128).  Row 127
                     carries the fc2 bias.
    """
    cw = np.asarray(conv_w, np.float32).reshape(5, K, K)      # (c, kh, kw)
    cb = np.asarray(conv_b, np.float32)
    f1w = np.asarray(fc1_w, np.float32)                       # (100, 320), col = c*64 + hw
    f1b = np.asarray(fc1_b, np.float32)
    f2w = np.asarray(fc2_w, np.float32)                       # (10, 100)
    f2b = np.asarray(fc2_b, np.float32)

    wc = np.zeros((PIX_PAD, CONV_LANES), np.float32)
    for hw in range(HW):
        oh, ow = divmod(hw, OW)
        col = hw * C_PAD
        for kh in range(K):
            for kw in range(K):
                pix = (STRIDE * oh + kh) * IMG_W + (STRIDE * ow + kw)
                wc[pix, col:col + 5] = cw[:, kh, kw]
        wc[ONE_PIX, col:col + 5] = cb                          # folded conv bias
    wc[ONE_PIX, ONE_CONV_LANE] = 1.0                           # conv lane 7 == 1

    w1 = np.zeros((HW, C_PAD, F1_PAD), np.float32)
    w1[:, :5, :F1_OUT] = np.transpose(f1w.reshape(F1_OUT, 5, HW), (2, 1, 0))
    w1 = w1.reshape(CONV_LANES, F1_PAD)
    w1[ONE_CONV_LANE, :F1_OUT] = f1b                           # folded fc1 bias
    w1[ONE_CONV_LANE, ONE_FC1_LANE] = 1.0                      # fc1 lane 127 == 1

    w2 = np.zeros((F1_PAD, F2_PAD), np.float32)
    w2[:F1_OUT, :F2_OUT] = f2w.T
    w2[ONE_FC1_LANE, :F2_OUT] = f2b                            # folded fc2 bias

    return (jnp.asarray(wc, dtype), jnp.asarray(w1, dtype), jnp.asarray(w2, dtype))


# ------------------------------ forward (jit) --------------------------------

@jax.jit
def cryptonet_forward(x, packed):
    """x: (B, 1, 28, 28) f32 NCHW; packed = pack_params(...).  Returns (B, 10)."""
    wc, w1, w2 = packed
    act_dtype = wc.dtype
    B = x.shape[0]

    # Lane-aligned raw-image slab: 784 pixels, constant-1 lane (feeds the
    # folded conv bias), zero pad to 896.  Replaces the old XLA-side im2col.
    slab = jnp.concatenate(
        [x.reshape(B, IMG_PIX).astype(act_dtype),
         jnp.ones((B, 1), act_dtype),
         jnp.zeros((B, PIX_PAD - IMG_PIX - 1), act_dtype)], axis=1)

    # Balanced batch tiles; >=2 tiles whenever B > 8 so v7x's two TensorCores
    # both get work; remainder padding is at most a few 896-wide rows.
    num_tiles = max(pl.cdiv(B, _MAX_BLOCK_B), min(2, pl.cdiv(B, 8)), 1)
    tb = _round_up(pl.cdiv(B, num_tiles), 8)
    bp = _round_up(B, tb)
    if bp != B:
        slab = jnp.pad(slab, ((0, bp - B), (0, 0)))

    resident = lambda i: (0, 0)
    out = pl.pallas_call(
        _cryptonet_kernel,
        out_shape=jax.ShapeDtypeStruct((bp, F2_PAD), jnp.float32),
        grid=(bp // tb,),
        in_specs=[
            pl.BlockSpec((tb, PIX_PAD), lambda i: (i, 0)),     # image tile
            pl.BlockSpec(wc.shape, resident),                  # resident weights
            pl.BlockSpec(w1.shape, resident),
            pl.BlockSpec(w2.shape, resident),
        ],
        out_specs=pl.BlockSpec((tb, F2_PAD), lambda i: (i, 0)),
        compiler_params=pltpu.CompilerParams(
            dimension_semantics=("parallel",),
            vmem_limit_bytes=32 * 1024 * 1024),
    )(slab, wc, w1, w2)
    return out[:B, :F2_OUT]


# ----------------------------- reference (pure JAX) --------------------------

def reference_forward(x, conv_w, conv_b, fc1_w, fc1_b, fc2_w, fc2_b):
    y = lax.conv_general_dilated(
        x, conv_w, window_strides=(STRIDE, STRIDE), padding="VALID",
        dimension_numbers=("NCHW", "OIHW", "NCHW"))
    y = y + conv_b[None, :, None, None]
    y = y.reshape(x.shape[0], -1)          # flatten(1): CHW order, 320 feats
    y = y * y
    y = y @ fc1_w.T + fc1_b
    y = y * y
    y = y @ fc2_w.T + fc2_b
    return y


# ----------------------------------- main ------------------------------------

if __name__ == "__main__":
    key = jax.random.PRNGKey(0)
    k_x, k_cw, k_cb, k_1w, k_1b, k_2w, k_2b = jax.random.split(key, 7)

    B = 2
    x = jax.random.uniform(k_x, (B, 1, 28, 28), dtype=jnp.float32)

    def uinit(k, shape, fan_in):
        bound = 1.0 / jnp.sqrt(float(fan_in))
        return jax.random.uniform(k, shape, jnp.float32, -bound, bound)

    conv_w = uinit(k_cw, (5, 1, 5, 5), 25)
    conv_b = uinit(k_cb, (5,), 25)
    fc1_w = uinit(k_1w, (100, 320), 320)
    fc1_b = uinit(k_1b, (100,), 320)
    fc2_w = uinit(k_2w, (10, 100), 100)
    fc2_b = uinit(k_2b, (10,), 100)

    ref = reference_forward(x, conv_w, conv_b, fc1_w, fc1_b, fc2_w, fc2_b)

    # f32 path: tight structural check.
    packed_f32 = pack_params(conv_w, conv_b, fc1_w, fc1_b, fc2_w, fc2_b,
                             dtype=jnp.float32)
    out_f32 = jax.block_until_ready(cryptonet_forward(x, packed_f32))
    assert out_f32.shape == (B, 10)
    assert jnp.allclose(out_f32, ref, rtol=5e-4, atol=2e-3), (
        f"f32 max abs err = {jnp.max(jnp.abs(out_f32 - ref))}")

    # bf16 deployment path: halves the HBM stream, native-rate MXU.  The two
    # square activations amplify rounding, so the tolerance is looser.
    packed_bf16 = pack_params(conv_w, conv_b, fc1_w, fc1_b, fc2_w, fc2_b,
                              dtype=jnp.bfloat16)
    out_bf16 = jax.block_until_ready(cryptonet_forward(x, packed_bf16))
    assert out_bf16.shape == (B, 10)
    assert jnp.allclose(out_bf16, ref, rtol=5e-2, atol=5e-2), (
        f"bf16 max abs err = {jnp.max(jnp.abs(out_bf16 - ref))}")

    print("KERNEL_OK")
</pallas_src>

<mosaic_0001>
module attributes {stable_mosaic.version = 11 : i64} {
  func.func @_cryptonet_kernel(%arg0: i32, %arg1: memref<8x896xf32, #tpu.memory_space<vmem>>, %arg2: memref<896x512xf32, #tpu.memory_space<vmem>>, %arg3: memref<512x128xf32, #tpu.memory_space<vmem>>, %arg4: memref<128x128xf32, #tpu.memory_space<vmem>>, %arg5: memref<8x128xf32, #tpu.memory_space<vmem>>) attributes {dimension_semantics = [#tpu.dimension_semantics<parallel>], iteration_bounds = array<i64: 1>, scalar_prefetch = 0 : i64, scratch_operands = 0 : i64, tpu.core_type = #tpu.core_type<tc>, window_params = [{transform_indices = @transform_0, window_bounds = array<i64: 8, 896>}, {pipeline_mode = #tpu.pipeline_mode<synchronous>, transform_indices = @transform_1, window_bounds = array<i64: 896, 512>}, {pipeline_mode = #tpu.pipeline_mode<synchronous>, transform_indices = @transform_2, window_bounds = array<i64: 512, 128>}, {pipeline_mode = #tpu.pipeline_mode<synchronous>, transform_indices = @transform_3, window_bounds = array<i64: 128, 128>}, {transform_indices = @transform_4, window_bounds = array<i64: 8, 128>}]} {
    %c0 = arith.constant 0 : index
    %c0_0 = arith.constant 0 : index
    %0 = vector.load %arg1[%c0, %c0_0] : memref<8x896xf32, #tpu.memory_space<vmem>>, vector<8x896xf32>
    %c0_1 = arith.constant 0 : index
    %c0_2 = arith.constant 0 : index
    %1 = vector.load %arg2[%c0_1, %c0_2] : memref<896x512xf32, #tpu.memory_space<vmem>>, vector<896x512xf32>
    %cst = arith.constant dense<0.000000e+00> : vector<8x512xf32>
    %2 = tpu.matmul %0, %1, %cst {dimension_numbers = #tpu.dot_dimension_numbers<[1], [0], [0], [1], [0, 0, 1, 1], [], []>} : vector<8x896xf32>, vector<896x512xf32>, vector<8x512xf32> -> vector<8x512xf32>
    %3 = arith.mulf %2, %2 : vector<8x512xf32>
    %c0_3 = arith.constant 0 : index
    %c0_4 = arith.constant 0 : index
    %4 = vector.load %arg3[%c0_3, %c0_4] : memref<512x128xf32, #tpu.memory_space<vmem>>, vector<512x128xf32>
    %cst_5 = arith.constant dense<0.000000e+00> : vector<8x128xf32>
    %5 = tpu.matmul %3, %4, %cst_5 {dimension_numbers = #tpu.dot_dimension_numbers<[1], [0], [0], [1], [0, 0, 1, 1], [], []>} : vector<8x512xf32>, vector<512x128xf32>, vector<8x128xf32> -> vector<8x128xf32>
    %6 = arith.mulf %5, %5 : vector<8x128xf32>
    %c0_6 = arith.constant 0 : index
    %c0_7 = arith.constant 0 : index
    %7 = vector.load %arg4[%c0_6, %c0_7] : memref<128x128xf32, #tpu.memory_space<vmem>>, vector<128x128xf32>
    %cst_8 = arith.constant dense<0.000000e+00> : vector<8x128xf32>
    %8 = tpu.matmul %6, %7, %cst_8 {dimension_numbers = #tpu.dot_dimension_numbers<[1], [0], [0], [1], [0, 0, 1, 1], [], []>} : vector<8x128xf32>, vector<128x128xf32>, vector<8x128xf32> -> vector<8x128xf32>
    %c0_9 = arith.constant 0 : index
    %c0_10 = arith.constant 0 : index
    %9 = vector.load %arg5[%c0_9, %c0_10] : memref<8x128xf32, #tpu.memory_space<vmem>>, vector<8x128xf32>
    tpu.vector_store %arg5[%c0_9, %c0_10], %8 {strides = array<i32>} : memref<8x128xf32, #tpu.memory_space<vmem>>, vector<8x128xf32>,
    return
  }
  func.func @transform_0(%arg0: i32) -> (i32, i32) {
    %c0_i32 = arith.constant 0 : i32
    %c0_i32_0 = arith.constant 0 : i32
    return %arg0, %c0_i32 : i32, i32
  }
  func.func @transform_1(%arg0: i32) -> (i32, i32) {
    %c0_i32 = arith.constant 0 : i32
    %c0_i32_0 = arith.constant 0 : i32
    %c0_i32_1 = arith.constant 0 : i32
    return %c0_i32, %c0_i32_0 : i32, i32
  }
  func.func @transform_2(%arg0: i32) -> (i32, i32) {
    %c0_i32 = arith.constant 0 : i32
    %c0_i32_0 = arith.constant 0 : i32
    %c0_i32_1 = arith.constant 0 : i32
    return %c0_i32, %c0_i32_0 : i32, i32
  }
  func.func @transform_3(%arg0: i32) -> (i32, i32) {
    %c0_i32 = arith.constant 0 : i32
    %c0_i32_0 = arith.constant 0 : i32
    %c0_i32_1 = arith.constant 0 : i32
    return %c0_i32, %c0_i32_0 : i32, i32
  }
  func.func @transform_4(%arg0: i32) -> (i32, i32) {
    %c0_i32 = arith.constant 0 : i32
    %c0_i32_0 = arith.constant 0 : i32
    return %arg0, %c0_i32 : i32, i32
  }
}

</mosaic_0001>

<bundles_post_ra>
// kernel: cryptonet_forward.1
= control target key start
LH: loop header
LB: loop body
LE: loop exit
PB: predicated region body
PF: predicated region fallthrough
CT: control target
= control target key end

     0   :  { %9 = vsyncpa [#allocation3], 0  ;;  %s1692_s0 = inlined_call_operand.vmem [shape: f32[8,896], index: 0, kind: input, shape index: {}]   ;;  %s1693_s1 = inlined_call_operand.hbm [shape: f32[896,512], index: 1, kind: input, shape index: {}]   ;;  %s1694_s2 = inlined_call_operand.hbm [shape: f32[512,128], index: 2, kind: input, shape index: {}]   ;;  %s1695_s3 = inlined_call_operand.hbm [shape: f32[128,128], index: 3, kind: input, shape index: {}]   ;;  %s1696_s4 = inlined_call_operand.vmem [shape: f32[8,128], index: 4, kind: output, shape index: {}]  }
   0x1   :  { %10 = vsyncpa [#allocation5], 0  ;;  %s1581_s15 = smov [#allocation4]  }
   0x2   :  { %s30_s16 = sshll.u32 %s1581_s15, 4  ;;  %s31_s16 = int_to_ptr.vmem [resolvable:$true] %s30_s16 }
   0x3   :  { %s1525_s17 = scalar_lea.vmem %s31_s16, 8192  ;;  %p1530_p1 = scmp.lt.s32.totalorder %s31_s16, %s31_s16 }
   0x4   :  { %p1526_p0 = scmp.ne.s32.totalorder %s31_s16, %s1525_s17  ;;  %p1531_p2 = scmp.lt.s32.totalorder %s1525_s17, %s1525_s17 }
   0x6   :  { %p1532_p3 = por %p1531_p2, %p1530_p1 }
   0x8   :  { %p1533_p4 = pnand %p1532_p3, %p1526_p0 }
   0xa   :  { %1536 = shalt.err (!%p1533_p4)
}
   0xb   :  { %s1582_s18 = smov 128   ;;  %s1583_s19 = smov 8  }
   0xc   :  { %36 = dma.hbm_to_vmem [thread:$0]  %s1694_s2, 8192, %s31_s16, [#allocation5], %s1582_s18, %s1582_s18, %s1583_s19  }
   0xd   :  { %s1584_s22 = smov [#allocation2]  }
   0xe   :  { %s18_s23 = sshll.u32 %s1584_s22, 4  ;;  %s19_s23 = int_to_ptr.vmem [resolvable:$true] %s18_s23 }
   0xf   :  { %s1545_s24 = scalar_lea.vmem %s19_s23, 57344  ;;  %p1550_p6 = scmp.lt.s32.totalorder %s19_s23, %s19_s23 }
  0x10   :  { %p1546_p5 = scmp.ne.s32.totalorder %s19_s23, %s1545_s24  ;;  %p1551_p7 = scmp.lt.s32.totalorder %s1545_s24, %s1545_s24 }
  0x12   :  { %p1552_p8 = por %p1551_p7, %p1550_p6 }
  0x14   :  { %p1553_p9 = pnand %p1552_p8, %p1546_p5 }
  0x16   :  { %1556 = shalt.err (!%p1553_p9)
}
  0x17   :  { %s1585_s25 = smov 512   ;;  %s1586_s26 = smov 32  }
  0x18   :  { %24 = dma.hbm_to_vmem [thread:$0]  %s1693_s1, 57344, %s19_s23, [#allocation3], %s1585_s25, %s1585_s25, %s1586_s26  }
  0x19   :  { %s1587_s29 = smov [#allocation6]  }
  0x1a   :  { %s42_s30 = sshll.u32 %s1587_s29, 4  ;;  %s43_s30 = int_to_ptr.vmem [resolvable:$true] %s42_s30 }
  0x1b   :  { %s1565_s2 = scalar_lea.vmem %s43_s30, 2048  ;;  %p1570_p11 = scmp.lt.s32.totalorder %s43_s30, %s43_s30 }
  0x1c   :  { %p1566_p10 = scmp.ne.s32.totalorder %s43_s30, %s1565_s2  ;;  %p1571_p12 = scmp.lt.s32.totalorder %s1565_s2, %s1565_s2 }
  0x1e   :  { %p1572_p13 = por %p1571_p12, %p1570_p11 }
  0x20   :  { %p1573_p0 = pnand %p1572_p13, %p1566_p10 }
  0x22   :  { %1576 = shalt.err (!%p1573_p0)
}
  0x23   :  { %48 = dma.hbm_to_vmem [thread:$0]  %s1695_s3, 2048, %s43_s30, [#allocation5], %s1582_s18, %s1582_s18, %s1583_s19  }
  0x24   :  { %1577 = dma.done.wait [#allocation3], 57344  }
  0x25   :  { %1578 = vsyncadd [#allocation3], 4294909952 }
  0x26   :  { %1579 = dma.done.wait [#allocation5], 10240  }
  0x27   :  { %1580 = vsyncadd [#allocation5], 4294957056  ;;  %v126_v0 = vld [vmem:[#allocation2 + $0x1e8] sm:$0xff]  ;;  %v125_v2 = vld [vmem:[#allocation2 + $0x1e0] sm:$0xff]  ;;  %vm1589_vm0 = vmmov 0  }
  0x28   :  { %v254_v1 = vld [vmem:[#allocation2 + $0x5e8] sm:$0xff]  ;;  %513 = vmatprep.subr.mxu0 %v126_v0  ;;  %v253_v3 = vld [vmem:[#allocation2 + $0x5e0] sm:$0xff] }
  0x29   :  { %584 = vmatprep.subr.mxu1 %v254_v1  ;;  %v122_v4 = vld [vmem:[#allocation2 + $0x1c8] sm:$0xff]  ;;  %514 = vmatpush1.msra.mxu0 %v125_v2  ;;  %v121_v6 = vld [vmem:[#allocation2 + $0x1c0] sm:$0xff] }
  0x2a   :  { %v250_v5 = vld [vmem:[#allocation2 + $0x5c8] sm:$0xff]  ;;  %585 = vmatpush1.msra.mxu1 %v253_v3  ;;  %v249_v7 = vld [vmem:[#allocation2 + $0x5c0] sm:$0xff]  ;;  %515 = vmatprep.subr.mxu0 %v122_v4 }
  0x2b   :  { %v118_v8 = vld [vmem:[#allocation2 + $0x1a8] sm:$0xff]  ;;  %586 = vmatprep.subr.mxu1 %v250_v5  ;;  %v117_v10 = vld [vmem:[#allocation2 + $0x1a0] sm:$0xff]  ;;  %516 = vmatpush1.msra.mxu0 %v121_v6 }
  0x2c   :  { %v246_v9 = vld [vmem:[#allocation2 + $0x5a8] sm:$0xff]  ;;  %v245_v11 = vld [vmem:[#allocation2 + $0x5a0] sm:$0xff]  ;;  %587 = vmatpush1.msra.mxu1 %v249_v7  ;;  %517 = vmatprep.subr.mxu0 %v118_v8 }
  0x2d   :  { %v114_v12 = vld [vmem:[#allocation2 + $0x188] sm:$0xff]  ;;  %588 = vmatprep.subr.mxu1 %v246_v9  ;;  %v113_v14 = vld [vmem:[#allocation2 + $0x180] sm:$0xff]  ;;  %518 = vmatpush1.msra.mxu0 %v117_v10 }
  0x2e   :  { %v242_v13 = vld [vmem:[#allocation2 + $0x588] sm:$0xff]  ;;  %v241_v15 = vld [vmem:[#allocation2 + $0x580] sm:$0xff]  ;;  %589 = vmatpush1.msra.mxu1 %v245_v11  ;;  %519 = vmatprep.subr.mxu0 %v114_v12 }
  0x2f   :  { %v110_v16 = vld [vmem:[#allocation2 + $0x168] sm:$0xff]  ;;  %590 = vmatprep.subr.mxu1 %v242_v13  ;;  %v109_v18 = vld [vmem:[#allocation2 + $0x160] sm:$0xff]  ;;  %520 = vmatpush1.msra.mxu0 %v113_v14 }
  0x30   :  { %v238_v17 = vld [vmem:[#allocation2 + $0x568] sm:$0xff]  ;;  %v237_v19 = vld [vmem:[#allocation2 + $0x560] sm:$0xff]  ;;  %591 = vmatpush1.msra.mxu1 %v241_v15  ;;  %521 = vmatprep.subr.mxu0 %v110_v16 }
  0x31   :  { %v106_v20 = vld [vmem:[#allocation2 + $0x148] sm:$0xff]  ;;  %592 = vmatprep.subr.mxu1 %v238_v17  ;;  %v105_v22 = vld [vmem:[#allocation2 + $0x140] sm:$0xff]  ;;  %522 = vmatpush1.msra.mxu0 %v109_v18 }
  0x32   :  { %v234_v21 = vld [vmem:[#allocation2 + $0x548] sm:$0xff]  ;;  %v233_v23 = vld [vmem:[#allocation2 + $0x540] sm:$0xff]  ;;  %593 = vmatpush1.msra.mxu1 %v237_v19  ;;  %523 = vmatprep.subr.mxu0 %v106_v20 }
  0x33   :  { %v102_v24 = vld [vmem:[#allocation2 + $0x128] sm:$0xff]  ;;  %594 = vmatprep.subr.mxu1 %v234_v21  ;;  %v101_v26 = vld [vmem:[#allocation2 + $0x120] sm:$0xff]  ;;  %524 = vmatpush1.msra.mxu0 %v105_v22 }
  0x34   :  { %v230_v25 = vld [vmem:[#allocation2 + $0x528] sm:$0xff]  ;;  %v229_v27 = vld [vmem:[#allocation2 + $0x520] sm:$0xff]  ;;  %595 = vmatpush1.msra.mxu1 %v233_v23  ;;  %525 = vmatprep.subr.mxu0 %v102_v24 }
  0x35   :  { %v98_v28 = vld [vmem:[#allocation2 + $0x108] sm:$0xff]  ;;  %596 = vmatprep.subr.mxu1 %v230_v25  ;;  %v97_v30 = vld [vmem:[#allocation2 + $0x100] sm:$0xff]  ;;  %526 = vmatpush1.msra.mxu0 %v101_v26 }
  0x36   :  { %v226_v29 = vld [vmem:[#allocation2 + $0x508] sm:$0xff]  ;;  %v225_v31 = vld [vmem:[#allocation2 + $0x500] sm:$0xff]  ;;  %597 = vmatpush1.msra.mxu1 %v229_v27  ;;  %527 = vmatprep.subr.mxu0 %v98_v28 }
  0x37   :  { %v94_v32 = vld [vmem:[#allocation2 + $0xe8] sm:$0xff]  ;;  %598 = vmatprep.subr.mxu1 %v226_v29  ;;  %v93_v34 = vld [vmem:[#allocation2 + $0xe0] sm:$0xff]  ;;  %528 = vmatpush1.msra.mxu0 %v97_v30 }
  0x38   :  { %v222_v33 = vld [vmem:[#allocation2 + $0x4e8] sm:$0xff]  ;;  %v221_v35 = vld [vmem:[#allocation2 + $0x4e0] sm:$0xff]  ;;  %599 = vmatpush1.msra.mxu1 %v225_v31  ;;  %529 = vmatprep.subr.mxu0 %v94_v32 }
  0x39   :  { %v90_v36 = vld [vmem:[#allocation2 + $0xc8] sm:$0xff]  ;;  %600 = vmatprep.subr.mxu1 %v222_v33  ;;  %v89_v38 = vld [vmem:[#allocation2 + $0xc0] sm:$0xff]  ;;  %530 = vmatpush1.msra.mxu0 %v93_v34 }
  0x3a   :  { %v218_v37 = vld [vmem:[#allocation2 + $0x4c8] sm:$0xff]  ;;  %v217_v39 = vld [vmem:[#allocation2 + $0x4c0] sm:$0xff]  ;;  %601 = vmatpush1.msra.mxu1 %v221_v35  ;;  %531 = vmatprep.subr.mxu0 %v90_v36 }
  0x3b   :  { %v86_v40 = vld [vmem:[#allocation2 + $0xa8] sm:$0xff]  ;;  %602 = vmatprep.subr.mxu1 %v218_v37  ;;  %v85_v42 = vld [vmem:[#allocation2 + $0xa0] sm:$0xff]  ;;  %532 = vmatpush1.msra.mxu0 %v89_v38 }
  0x3c   :  { %v214_v41 = vld [vmem:[#allocation2 + $0x4a8] sm:$0xff]  ;;  %v213_v43 = vld [vmem:[#allocation2 + $0x4a0] sm:$0xff]  ;;  %603 = vmatpush1.msra.mxu1 %v217_v39  ;;  %533 = vmatprep.subr.mxu0 %v86_v40 }
  0x3d   :  { %v82_v44 = vld [vmem:[#allocation2 + $0x88] sm:$0xff]  ;;  %604 = vmatprep.subr.mxu1 %v214_v41  ;;  %v81_v46 = vld [vmem:[#allocation2 + $0x80] sm:$0xff]  ;;  %534 = vmatpush1.msra.mxu0 %v85_v42 }
  0x3e   :  { %v210_v45 = vld [vmem:[#allocation2 + $0x488] sm:$0xff]  ;;  %v209_v47 = vld [vmem:[#allocation2 + $0x480] sm:$0xff]  ;;  %605 = vmatpush1.msra.mxu1 %v213_v43  ;;  %535 = vmatprep.subr.mxu0 %v82_v44 }
  0x3f   :  { %v78_v48 = vld [vmem:[#allocation2 + $0x68] sm:$0xff]  ;;  %606 = vmatprep.subr.mxu1 %v210_v45  ;;  %v77_v50 = vld [vmem:[#allocation2 + $0x60] sm:$0xff]  ;;  %536 = vmatpush1.msra.mxu0 %v81_v46 }
  0x40   :  { %v206_v49 = vld [vmem:[#allocation2 + $0x468] sm:$0xff]  ;;  %v205_v51 = vld [vmem:[#allocation2 + $0x460] sm:$0xff]  ;;  %607 = vmatpush1.msra.mxu1 %v209_v47  ;;  %537 = vmatprep.subr.mxu0 %v78_v48 }
  0x41   :  { %v74_v52 = vld [vmem:[#allocation2 + $0x48] sm:$0xff]  ;;  %608 = vmatprep.subr.mxu1 %v206_v49  ;;  %v73_v54 = vld [vmem:[#allocation2 + $0x40] sm:$0xff]  ;;  %538 = vmatpush1.msra.mxu0 %v77_v50 }
  0x42   :  { %v202_v53 = vld [vmem:[#allocation2 + $0x448] sm:$0xff]  ;;  %v201_v55 = vld [vmem:[#allocation2 + $0x440] sm:$0xff]  ;;  %609 = vmatpush1.msra.mxu1 %v205_v51  ;;  %539 = vmatprep.subr.mxu0 %v74_v52 }
  0x43   :  { %v70_v56 = vld [vmem:[#allocation2 + $0x28] sm:$0xff]  ;;  %610 = vmatprep.subr.mxu1 %v202_v53  ;;  %v69_v58 = vld [vmem:[#allocation2 + $0x20] sm:$0xff]  ;;  %540 = vmatpush1.msra.mxu0 %v73_v54 }
  0x44   :  { %v198_v57 = vld [vmem:[#allocation2 + $0x428] sm:$0xff]  ;;  %v197_v59 = vld [vmem:[#allocation2 + $0x420] sm:$0xff]  ;;  %611 = vmatpush1.msra.mxu1 %v201_v55  ;;  %541 = vmatprep.subr.mxu0 %v70_v56 }
  0x45   :  { %v66_v60 = vld [vmem:[#allocation2 + $0x8] sm:$0xff]  ;;  %612 = vmatprep.subr.mxu1 %v198_v57  ;;  %v65_v62 = vld [vmem:[#allocation2] sm:$0xff]  ;;  %542 = vmatpush1.msra.mxu0 %v69_v58 }
  0x46   :  { %v194_v61 = vld [vmem:[#allocation2 + $0x408] sm:$0xff]  ;;  %v193_v63 = vld [vmem:[#allocation2 + $0x400] sm:$0xff]  ;;  %613 = vmatpush1.msra.mxu1 %v197_v59  ;;  %543 = vmatprep.subr.mxu0 %v66_v60 }
  0x47   :  { %v190_v0 = vld [vmem:[#allocation2 + $0x3e8] sm:$0xff]  ;;  %614 = vmatprep.subr.mxu1 %v194_v61  ;;  %v189_v2 = vld [vmem:[#allocation2 + $0x3e0] sm:$0xff]  ;;  %544 = vmatpush1.msra.mxu0 %v65_v62 }
  0x48   :  { %v318_v1 = vld [vmem:[#allocation2 + $0x7e8] sm:$0xff]  ;;  %v317_v3 = vld [vmem:[#allocation2 + $0x7e0] sm:$0xff]  ;;  %615 = vmatpush1.msra.mxu1 %v193_v63  ;;  %545 = vmatprep.subr.mxu0 %v190_v0 }
  0x49   :  { %v186_v4 = vld [vmem:[#allocation2 + $0x3c8] sm:$0xff]  ;;  %616 = vmatprep.subr.mxu1 %v318_v1  ;;  %v185_v6 = vld [vmem:[#allocation2 + $0x3c0] sm:$0xff]  ;;  %546 = vmatpush2.msra.mxu0 %v189_v2  ;;  %v61_v1 = vld [vmem:[%s1692_s0 + $0x18] sm:$0xff] }
  0x4a   :  { %v314_v5 = vld [vmem:[#allocation2 + $0x7c8] sm:$0xff]  ;;  %v313_v7 = vld [vmem:[#allocation2 + $0x7c0] sm:$0xff]  ;;  %617 = vmatpush2.msra.mxu1 %v317_v3  ;;  %547 = vmatprep.subr.mxu0 %v186_v4  ;;  %v60_v3 = vld [vmem:[%s1692_s0 + $0x10] sm:$0xff] }
  0x4b   :  { %v182_v8 = vld [vmem:[#allocation2 + $0x3a8] sm:$0xff]  ;;  %618 = vmatprep.subr.mxu1 %v314_v5  ;;  %v181_v10 = vld [vmem:[#allocation2 + $0x3a0] sm:$0xff]  ;;  %548 = vmatpush2.msra.mxu0 %v185_v6 }
  0x4c   :  { %v310_v9 = vld [vmem:[#allocation2 + $0x7a8] sm:$0xff]  ;;  %v309_v11 = vld [vmem:[#allocation2 + $0x7a0] sm:$0xff]  ;;  %619 = vmatpush2.msra.mxu1 %v313_v7  ;;  %549 = vmatprep.subr.mxu0 %v182_v8 }
  0x4d   :  { %v178_v12 = vld [vmem:[#allocation2 + $0x388] sm:$0xff]  ;;  %620 = vmatprep.subr.mxu1 %v310_v9  ;;  %v177_v14 = vld [vmem:[#allocation2 + $0x380] sm:$0xff]  ;;  %550 = vmatpush2.msra.mxu0 %v181_v10 }
  0x4e   :  { %v306_v13 = vld [vmem:[#allocation2 + $0x788] sm:$0xff]  ;;  %v305_v15 = vld [vmem:[#allocation2 + $0x780] sm:$0xff]  ;;  %621 = vmatpush2.msra.mxu1 %v309_v11  ;;  %551 = vmatprep.subr.mxu0 %v178_v12 }
  0x4f   :  { %v174_v16 = vld [vmem:[#allocation2 + $0x368] sm:$0xff]  ;;  %622 = vmatprep.subr.mxu1 %v306_v13  ;;  %v173_v18 = vld [vmem:[#allocation2 + $0x360] sm:$0xff]  ;;  %552 = vmatpush2.msra.mxu0 %v177_v14 }
  0x50   :  { %v302_v17 = vld [vmem:[#allocation2 + $0x768] sm:$0xff]  ;;  %v301_v19 = vld [vmem:[#allocation2 + $0x760] sm:$0xff]  ;;  %623 = vmatpush2.msra.mxu1 %v305_v15  ;;  %553 = vmatprep.subr.mxu0 %v174_v16 }
  0x51   :  { %v170_v20 = vld [vmem:[#allocation2 + $0x348] sm:$0xff]  ;;  %624 = vmatprep.subr.mxu1 %v302_v17  ;;  %v169_v22 = vld [vmem:[#allocation2 + $0x340] sm:$0xff]  ;;  %554 = vmatpush2.msra.mxu0 %v173_v18 }
  0x52   :  { %v298_v21 = vld [vmem:[#allocation2 + $0x748] sm:$0xff]  ;;  %v297_v23 = vld [vmem:[#allocation2 + $0x740] sm:$0xff]  ;;  %625 = vmatpush2.msra.mxu1 %v301_v19  ;;  %555 = vmatprep.subr.mxu0 %v170_v20 }
  0x53   :  { %v166_v24 = vld [vmem:[#allocation2 + $0x328] sm:$0xff]  ;;  %626 = vmatprep.subr.mxu1 %v298_v21  ;;  %v165_v26 = vld [vmem:[#allocation2 + $0x320] sm:$0xff]  ;;  %556 = vmatpush2.msra.mxu0 %v169_v22 }
  0x54   :  { %v294_v25 = vld [vmem:[#allocation2 + $0x728] sm:$0xff]  ;;  %v293_v27 = vld [vmem:[#allocation2 + $0x720] sm:$0xff]  ;;  %627 = vmatpush2.msra.mxu1 %v297_v23  ;;  %557 = vmatprep.subr.mxu0 %v166_v24 }
  0x55   :  { %v162_v28 = vld [vmem:[#allocation2 + $0x308] sm:$0xff]  ;;  %628 = vmatprep.subr.mxu1 %v294_v25  ;;  %v161_v30 = vld [vmem:[#allocation2 + $0x300] sm:$0xff]  ;;  %558 = vmatpush2.msra.mxu0 %v165_v26 }
  0x56   :  { %v290_v29 = vld [vmem:[#allocation2 + $0x708] sm:$0xff]  ;;  %v289_v31 = vld [vmem:[#allocation2 + $0x700] sm:$0xff]  ;;  %629 = vmatpush2.msra.mxu1 %v293_v27  ;;  %559 = vmatprep.subr.mxu0 %v162_v28 }
  0x57   :  { %v158_v32 = vld [vmem:[#allocation2 + $0x2e8] sm:$0xff]  ;;  %630 = vmatprep.subr.mxu1 %v290_v29  ;;  %v157_v34 = vld [vmem:[#allocation2 + $0x2e0] sm:$0xff]  ;;  %560 = vmatpush2.msra.mxu0 %v161_v30 }
  0x58   :  { %v286_v33 = vld [vmem:[#allocation2 + $0x6e8] sm:$0xff]  ;;  %v285_v35 = vld [vmem:[#allocation2 + $0x6e0] sm:$0xff]  ;;  %631 = vmatpush2.msra.mxu1 %v289_v31  ;;  %561 = vmatprep.subr.mxu0 %v158_v32 }
  0x59   :  { %v154_v36 = vld [vmem:[#allocation2 + $0x2c8] sm:$0xff]  ;;  %632 = vmatprep.subr.mxu1 %v286_v33  ;;  %v153_v38 = vld [vmem:[#allocation2 + $0x2c0] sm:$0xff]  ;;  %562 = vmatpush2.msra.mxu0 %v157_v34 }
  0x5a   :  { %v282_v37 = vld [vmem:[#allocation2 + $0x6c8] sm:$0xff]  ;;  %v281_v39 = vld [vmem:[#allocation2 + $0x6c0] sm:$0xff]  ;;  %633 = vmatpush2.msra.mxu1 %v285_v35  ;;  %563 = vmatprep.subr.mxu0 %v154_v36 }
  0x5b   :  { %v150_v40 = vld [vmem:[#allocation2 + $0x2a8] sm:$0xff]  ;;  %634 = vmatprep.subr.mxu1 %v282_v37  ;;  %v149_v42 = vld [vmem:[#allocation2 + $0x2a0] sm:$0xff]  ;;  %564 = vmatpush2.msra.mxu0 %v153_v38 }
  0x5c   :  { %v278_v41 = vld [vmem:[#allocation2 + $0x6a8] sm:$0xff]  ;;  %v277_v43 = vld [vmem:[#allocation2 + $0x6a0] sm:$0xff]  ;;  %635 = vmatpush2.msra.mxu1 %v281_v39  ;;  %565 = vmatprep.subr.mxu0 %v150_v40 }
  0x5d   :  { %v146_v44 = vld [vmem:[#allocation2 + $0x288] sm:$0xff]  ;;  %636 = vmatprep.subr.mxu1 %v278_v41  ;;  %v145_v46 = vld [vmem:[#allocation2 + $0x280] sm:$0xff]  ;;  %566 = vmatpush2.msra.mxu0 %v149_v42 }
  0x5e   :  { %v274_v45 = vld [vmem:[#allocation2 + $0x688] sm:$0xff]  ;;  %v273_v47 = vld [vmem:[#allocation2 + $0x680] sm:$0xff]  ;;  %637 = vmatpush2.msra.mxu1 %v277_v43  ;;  %567 = vmatprep.subr.mxu0 %v146_v44 }
  0x5f   :  { %v142_v48 = vld [vmem:[#allocation2 + $0x268] sm:$0xff]  ;;  %638 = vmatprep.subr.mxu1 %v274_v45  ;;  %v141_v50 = vld [vmem:[#allocation2 + $0x260] sm:$0xff]  ;;  %568 = vmatpush2.msra.mxu0 %v145_v46 }
  0x60   :  { %v270_v49 = vld [vmem:[#allocation2 + $0x668] sm:$0xff]  ;;  %v269_v51 = vld [vmem:[#allocation2 + $0x660] sm:$0xff]  ;;  %639 = vmatpush2.msra.mxu1 %v273_v47  ;;  %569 = vmatprep.subr.mxu0 %v142_v48 }
  0x61   :  { %v138_v52 = vld [vmem:[#allocation2 + $0x248] sm:$0xff]  ;;  %640 = vmatprep.subr.mxu1 %v270_v49  ;;  %v137_v54 = vld [vmem:[#allocation2 + $0x240] sm:$0xff]  ;;  %570 = vmatpush2.msra.mxu0 %v141_v50 }
  0x62   :  { %v266_v53 = vld [vmem:[#allocation2 + $0x648] sm:$0xff]  ;;  %v265_v55 = vld [vmem:[#allocation2 + $0x640] sm:$0xff]  ;;  %641 = vmatpush2.msra.mxu1 %v269_v51  ;;  %571 = vmatprep.subr.mxu0 %v138_v52 }
  0x63   :  { %v134_v56 = vld [vmem:[#allocation2 + $0x228] sm:$0xff]  ;;  %642 = vmatprep.subr.mxu1 %v266_v53  ;;  %v133_v58 = vld [vmem:[#allocation2 + $0x220] sm:$0xff]  ;;  %572 = vmatpush2.msra.mxu0 %v137_v54 }
  0x64   :  { %v262_v57 = vld [vmem:[#allocation2 + $0x628] sm:$0xff]  ;;  %v261_v59 = vld [vmem:[#allocation2 + $0x620] sm:$0xff]  ;;  %643 = vmatpush2.msra.mxu1 %v265_v55  ;;  %573 = vmatprep.subr.mxu0 %v134_v56 }
  0x65   :  { %v130_v60 = vld [vmem:[#allocation2 + $0x208] sm:$0xff]  ;;  %644 = vmatprep.subr.mxu1 %v262_v57  ;;  %v129_v62 = vld [vmem:[#allocation2 + $0x200] sm:$0xff]  ;;  %574 = vmatpush2.msra.mxu0 %v133_v58 }
  0x66   :  { %v258_v61 = vld [vmem:[#allocation2 + $0x608] sm:$0xff]  ;;  %645 = vmatpush2.msra.mxu1 %v261_v59  ;;  %v257_v0 = vld [vmem:[#allocation2 + $0x600] sm:$0xff]  ;;  %575 = vmatprep.subr.mxu0 %v130_v60 }
  0x67   :  { %v1627_v63 = vld [vmem:[%s1692_s0 + $0x8] sm:$0xff]  ;;  %646 = vmatprep.subr.mxu1 %v258_v61  ;;  %v1635_v2 = vld [vmem:[%s1692_s0] sm:$0xff]  ;;  %576 = vmatpush2.msra.mxu0 %v129_v62 }
  0x68   :  { %577 = vmatprep.mubr.f32.mxu0 %v1627_v63  ;;  %v382_v4 = vld [vmem:[#allocation2 + $0x9e8] sm:$0xff]  ;;  %647 = vmatpush2.msra.mxu1 %v257_v0  ;;  %v381_v6 = vld [vmem:[#allocation2 + $0x9e0] sm:$0xff] }
  0x69   :  { %v510_v5 = vld [vmem:[#allocation2 + $0xde8] sm:$0xff]  ;;  %648 = vmatprep.mubr.f32.mxu1 %v61_v1  ;;  %v509_v7 = vld [vmem:[#allocation2 + $0xde0] sm:$0xff]  ;;  %578 = vmatmul.mubr.f32.vlgmr.msra.gmra.mxu0 %v1635_v2 }
  0x6a   :  { %649 = vmatmul.mubr.f32.vlgmr.msra.gmra.mxu1 %v60_v3  ;;  %v378_v8 = vld [vmem:[#allocation2 + $0x9c8] sm:$0xff]  ;;  %655 = vmatprep.subr.mxu0 %v382_v4  ;;  %v377_v10 = vld [vmem:[#allocation2 + $0x9c0] sm:$0xff] }
  0x6b   :  { %v506_v9 = vld [vmem:[#allocation2 + $0xdc8] sm:$0xff]  ;;  %726 = vmatprep.subr.mxu1 %v510_v5  ;;  %v505_v11 = vld [vmem:[#allocation2 + $0xdc0] sm:$0xff]  ;;  %656 = vmatpush1.msra.mxu0 %v381_v6 }
  0x6c   :  { %727 = vmatpush1.msra.mxu1 %v509_v7  ;;  %v374_v12 = vld [vmem:[#allocation2 + $0x9a8] sm:$0xff]  ;;  %657 = vmatprep.subr.mxu0 %v378_v8  ;;  %v373_v14 = vld [vmem:[#allocation2 + $0x9a0] sm:$0xff]  ;;  %v64_v7 = vld [vmem:[%s1692_s0 + $0x30] sm:$0xff] }
  0x6d   :  { %v502_v13 = vld [vmem:[#allocation2 + $0xda8] sm:$0xff]  ;;  %728 = vmatprep.subr.mxu1 %v506_v9  ;;  %v501_v15 = vld [vmem:[#allocation2 + $0xda0] sm:$0xff]  ;;  %658 = vmatpush1.msra.mxu0 %v377_v10  ;;  %v128_v8 = vld [vmem:[#allocation2 + $0x1f8] sm:$0xff] }
  0x6e   :  { %729 = vmatpush1.msra.mxu1 %v505_v11  ;;  %v370_v16 = vld [vmem:[#allocation2 + $0x988] sm:$0xff]  ;;  %659 = vmatprep.subr.mxu0 %v374_v12  ;;  %v369_v18 = vld [vmem:[#allocation2 + $0x980] sm:$0xff]  ;;  %v127_v10 = vld [vmem:[#allocation2 + $0x1f0] sm:$0xff]  ;;  %v1588_v11 = vmov 0.0  }
  0x6f   :  { %v498_v17 = vld [vmem:[#allocation2 + $0xd88] sm:$0xff]  ;;  %730 = vmatprep.subr.mxu1 %v502_v13  ;;  %v497_v19 = vld [vmem:[#allocation2 + $0xd80] sm:$0xff]  ;;  %660 = vmatpush1.msra.mxu0 %v373_v14  ;;  %v124_v13 = vld [vmem:[#allocation2 + $0x1d8] sm:$0xff] }
  0x70   :  { %731 = vmatpush1.msra.mxu1 %v501_v15  ;;  %v366_v20 = vld [vmem:[#allocation2 + $0x968] sm:$0xff]  ;;  %661 = vmatprep.subr.mxu0 %v370_v16  ;;  %v365_v22 = vld [vmem:[#allocation2 + $0x960] sm:$0xff]  ;;  %v123_v15 = vld [vmem:[#allocation2 + $0x1d0] sm:$0xff] }
  0x71   :  { %v494_v21 = vld [vmem:[#allocation2 + $0xd68] sm:$0xff]  ;;  %732 = vmatprep.subr.mxu1 %v498_v17  ;;  %v493_v23 = vld [vmem:[#allocation2 + $0xd60] sm:$0xff]  ;;  %662 = vmatpush1.msra.mxu0 %v369_v18  ;;  %v120_v17 = vld [vmem:[#allocation2 + $0x1b8] sm:$0xff] }
  0x72   :  { %733 = vmatpush1.msra.mxu1 %v497_v19  ;;  %v362_v24 = vld [vmem:[#allocation2 + $0x948] sm:$0xff]  ;;  %663 = vmatprep.subr.mxu0 %v366_v20  ;;  %v361_v26 = vld [vmem:[#allocation2 + $0x940] sm:$0xff]  ;;  %v119_v19 = vld [vmem:[#allocation2 + $0x1b0] sm:$0xff] }
  0x73   :  { %v490_v25 = vld [vmem:[#allocation2 + $0xd48] sm:$0xff]  ;;  %734 = vmatprep.subr.mxu1 %v494_v21  ;;  %v489_v27 = vld [vmem:[#allocation2 + $0xd40] sm:$0xff]  ;;  %664 = vmatpush1.msra.mxu0 %v365_v22  ;;  %v116_v21 = vld [vmem:[#allocation2 + $0x198] sm:$0xff] }
  0x74   :  { %735 = vmatpush1.msra.mxu1 %v493_v23  ;;  %v358_v28 = vld [vmem:[#allocation2 + $0x928] sm:$0xff]  ;;  %665 = vmatprep.subr.mxu0 %v362_v24  ;;  %v357_v30 = vld [vmem:[#allocation2 + $0x920] sm:$0xff]  ;;  %v115_v23 = vld [vmem:[#allocation2 + $0x190] sm:$0xff] }
  0x75   :  { %v486_v29 = vld [vmem:[#allocation2 + $0xd28] sm:$0xff]  ;;  %736 = vmatprep.subr.mxu1 %v490_v25  ;;  %v485_v31 = vld [vmem:[#allocation2 + $0xd20] sm:$0xff]  ;;  %666 = vmatpush1.msra.mxu0 %v361_v26  ;;  %v112_v25 = vld [vmem:[#allocation2 + $0x178] sm:$0xff] }
  0x76   :  { %737 = vmatpush1.msra.mxu1 %v489_v27  ;;  %v354_v32 = vld [vmem:[#allocation2 + $0x908] sm:$0xff]  ;;  %667 = vmatprep.subr.mxu0 %v358_v28  ;;  %v353_v34 = vld [vmem:[#allocation2 + $0x900] sm:$0xff]  ;;  %v111_v27 = vld [vmem:[#allocation2 + $0x170] sm:$0xff] }
  0x77   :  { %v482_v33 = vld [vmem:[#allocation2 + $0xd08] sm:$0xff]  ;;  %738 = vmatprep.subr.mxu1 %v486_v29  ;;  %v481_v35 = vld [vmem:[#allocation2 + $0xd00] sm:$0xff]  ;;  %668 = vmatpush1.msra.mxu0 %v357_v30  ;;  %v108_v29 = vld [vmem:[#allocation2 + $0x158] sm:$0xff] }
  0x78   :  { %739 = vmatpush1.msra.mxu1 %v485_v31  ;;  %v350_v36 = vld [vmem:[#allocation2 + $0x8e8] sm:$0xff]  ;;  %669 = vmatprep.subr.mxu0 %v354_v32  ;;  %v349_v38 = vld [vmem:[#allocation2 + $0x8e0] sm:$0xff]  ;;  %v107_v31 = vld [vmem:[#allocation2 + $0x150] sm:$0xff] }
  0x79   :  { %v478_v37 = vld [vmem:[#allocation2 + $0xce8] sm:$0xff]  ;;  %740 = vmatprep.subr.mxu1 %v482_v33  ;;  %v477_v39 = vld [vmem:[#allocation2 + $0xce0] sm:$0xff]  ;;  %670 = vmatpush1.msra.mxu0 %v353_v34  ;;  %v104_v33 = vld [vmem:[#allocation2 + $0x138] sm:$0xff] }
  0x7a   :  { %741 = vmatpush1.msra.mxu1 %v481_v35  ;;  %v346_v40 = vld [vmem:[#allocation2 + $0x8c8] sm:$0xff]  ;;  %671 = vmatprep.subr.mxu0 %v350_v36  ;;  %v345_v42 = vld [vmem:[#allocation2 + $0x8c0] sm:$0xff]  ;;  %v103_v35 = vld [vmem:[#allocation2 + $0x130] sm:$0xff] }
  0x7b   :  { %v474_v41 = vld [vmem:[#allocation2 + $0xcc8] sm:$0xff]  ;;  %742 = vmatprep.subr.mxu1 %v478_v37  ;;  %v473_v43 = vld [vmem:[#allocation2 + $0xcc0] sm:$0xff]  ;;  %672 = vmatpush1.msra.mxu0 %v349_v38  ;;  %v100_v37 = vld [vmem:[#allocation2 + $0x118] sm:$0xff] }
  0x7c   :  { %743 = vmatpush1.msra.mxu1 %v477_v39  ;;  %v342_v44 = vld [vmem:[#allocation2 + $0x8a8] sm:$0xff]  ;;  %673 = vmatprep.subr.mxu0 %v346_v40  ;;  %v341_v46 = vld [vmem:[#allocation2 + $0x8a0] sm:$0xff]  ;;  %v99_v39 = vld [vmem:[#allocation2 + $0x110] sm:$0xff] }
  0x7d   :  { %v470_v45 = vld [vmem:[#allocation2 + $0xca8] sm:$0xff]  ;;  %744 = vmatprep.subr.mxu1 %v474_v41  ;;  %v469_v47 = vld [vmem:[#allocation2 + $0xca0] sm:$0xff]  ;;  %674 = vmatpush1.msra.mxu0 %v345_v42  ;;  %v96_v41 = vld [vmem:[#allocation2 + $0xf8] sm:$0xff] }
  0x7e   :  { %745 = vmatpush1.msra.mxu1 %v473_v43  ;;  %v338_v48 = vld [vmem:[#allocation2 + $0x888] sm:$0xff]  ;;  %675 = vmatprep.subr.mxu0 %v342_v44  ;;  %v337_v50 = vld [vmem:[#allocation2 + $0x880] sm:$0xff]  ;;  %v95_v43 = vld [vmem:[#allocation2 + $0xf0] sm:$0xff] }
  0x7f   :  { %v466_v49 = vld [vmem:[#allocation2 + $0xc88] sm:$0xff]  ;;  %746 = vmatprep.subr.mxu1 %v470_v45  ;;  %v465_v51 = vld [vmem:[#allocation2 + $0xc80] sm:$0xff]  ;;  %676 = vmatpush1.msra.mxu0 %v341_v46  ;;  %v92_v45 = vld [vmem:[#allocation2 + $0xd8] sm:$0xff] }
  0x80   :  { %747 = vmatpush1.msra.mxu1 %v469_v47  ;;  %v334_v52 = vld [vmem:[#allocation2 + $0x868] sm:$0xff]  ;;  %677 = vmatprep.subr.mxu0 %v338_v48  ;;  %v333_v54 = vld [vmem:[#allocation2 + $0x860] sm:$0xff]  ;;  %v91_v47 = vld [vmem:[#allocation2 + $0xd0] sm:$0xff] }
  0x81   :  { %v462_v53 = vld [vmem:[#allocation2 + $0xc68] sm:$0xff]  ;;  %748 = vmatprep.subr.mxu1 %v466_v49  ;;  %v461_v55 = vld [vmem:[#allocation2 + $0xc60] sm:$0xff]  ;;  %678 = vmatpush1.msra.mxu0 %v337_v50  ;;  %v88_v49 = vld [vmem:[#allocation2 + $0xb8] sm:$0xff] }
  0x82   :  { %749 = vmatpush1.msra.mxu1 %v465_v51  ;;  %v330_v56 = vld [vmem:[#allocation2 + $0x848] sm:$0xff]  ;;  %679 = vmatprep.subr.mxu0 %v334_v52  ;;  %v329_v58 = vld [vmem:[#allocation2 + $0x840] sm:$0xff]  ;;  %v87_v51 = vld [vmem:[#allocation2 + $0xb0] sm:$0xff] }
  0x83   :  { %v458_v57 = vld [vmem:[#allocation2 + $0xc48] sm:$0xff]  ;;  %750 = vmatprep.subr.mxu1 %v462_v53  ;;  %v457_v59 = vld [vmem:[#allocation2 + $0xc40] sm:$0xff]  ;;  %680 = vmatpush1.msra.mxu0 %v333_v54  ;;  %v84_v53 = vld [vmem:[#allocation2 + $0x98] sm:$0xff] }
  0x84   :  { %751 = vmatpush1.msra.mxu1 %v461_v55  ;;  %v326_v60 = vld [vmem:[#allocation2 + $0x828] sm:$0xff]  ;;  %681 = vmatprep.subr.mxu0 %v330_v56  ;;  %v325_v62 = vld [vmem:[#allocation2 + $0x820] sm:$0xff]  ;;  %v83_v55 = vld [vmem:[#allocation2 + $0x90] sm:$0xff] }
  0x85   :  { %v454_v61 = vld [vmem:[#allocation2 + $0xc28] sm:$0xff]  ;;  %752 = vmatprep.subr.mxu1 %v458_v57  ;;  %v453_v0 = vld [vmem:[#allocation2 + $0xc20] sm:$0xff]  ;;  %682 = vmatpush1.msra.mxu0 %v329_v58  ;;  %v80_v57 = vld [vmem:[#allocation2 + $0x78] sm:$0xff] }
  0x86   :  { %753 = vmatpush1.msra.mxu1 %v457_v59  ;;  %v322_v1 = vld [vmem:[#allocation2 + $0x808] sm:$0xff]  ;;  %683 = vmatprep.subr.mxu0 %v326_v60  ;;  %v321_v4 = vld [vmem:[#allocation2 + $0x800] sm:$0xff]  ;;  %v79_v59 = vld [vmem:[#allocation2 + $0x70] sm:$0xff] }
  0x87   :  { %v450_v3 = vld [vmem:[#allocation2 + $0xc08] sm:$0xff]  ;;  %754 = vmatprep.subr.mxu1 %v454_v61  ;;  %v449_v5 = vld [vmem:[#allocation2 + $0xc00] sm:$0xff]  ;;  %684 = vmatpush1.msra.mxu0 %v325_v62  ;;  %v76_v61 = vld [vmem:[#allocation2 + $0x58] sm:$0xff] }
  0x88   :  { %755 = vmatpush1.msra.mxu1 %v453_v0  ;;  %v446_v6 = vld [vmem:[#allocation2 + $0xbe8] sm:$0xff]  ;;  %685 = vmatprep.subr.mxu0 %v322_v1  ;;  %v445_v9 = vld [vmem:[#allocation2 + $0xbe0] sm:$0xff]  ;;  %v75_v0 = vld [vmem:[#allocation2 + $0x50] sm:$0xff] }
  0x89   :  { %756 = vmatprep.subr.mxu1 %v450_v3  ;;  %686 = vmatpush1.msra.mxu0 %v321_v4  ;;  %v442_v12 = vld [vmem:[#allocation2 + $0xbc8] sm:$0xff]  ;;  %v441_v14 = vld [vmem:[#allocation2 + $0xbc0] sm:$0xff]  ;;  %v72_v3 = vld [vmem:[#allocation2 + $0x38] sm:$0xff] }
  0x8a   :  { %757 = vmatpush1.msra.mxu1 %v449_v5  ;;  %790 = vmatprep.mubr.f32.mxu1 %v1588_v11  ;;  %v438_v16 = vld [vmem:[#allocation2 + $0xba8] sm:$0xff]  ;;  %v437_v18 = vld [vmem:[#allocation2 + $0xba0] sm:$0xff]  ;;  %v71_v5 = vld [vmem:[#allocation2 + $0x30] sm:$0xff] }
  0x8b   :  { %687 = vmatprep.subr.mxu0 %v446_v6  ;;  %791 = vmatmul.mubr.f32.vlgmr.msra.gmra.mxu1 %v64_v7  ;;  %v434_v20 = vld [vmem:[#allocation2 + $0xb88] sm:$0xff]  ;;  %v433_v22 = vld [vmem:[#allocation2 + $0xb80] sm:$0xff]  ;;  %v68_v7 = vld [vmem:[#allocation2 + $0x18] sm:$0xff] }
  0x8c   :  { %797 = vmatprep.subr.mxu1 %v128_v8  ;;  %688 = vmatpush2.msra.mxu0 %v445_v9  ;;  %v430_v24 = vld [vmem:[#allocation2 + $0xb68] sm:$0xff]  ;;  %v429_v26 = vld [vmem:[#allocation2 + $0xb60] sm:$0xff] }
  0x8d   :  { %798 = vmatpush1.msra.mxu1 %v127_v10  ;;  %689 = vmatprep.subr.mxu0 %v442_v12  ;;  %v426_v28 = vld [vmem:[#allocation2 + $0xb48] sm:$0xff]  ;;  %v425_v30 = vld [vmem:[#allocation2 + $0xb40] sm:$0xff]  ;;  %v67_v10 = vld [vmem:[#allocation2 + $0x10] sm:$0xff] }
  0x8e   :  { %799 = vmatprep.subr.mxu1 %v124_v13  ;;  %690 = vmatpush2.msra.mxu0 %v441_v14  ;;  %v422_v32 = vld [vmem:[#allocation2 + $0xb28] sm:$0xff]  ;;  %v421_v34 = vld [vmem:[#allocation2 + $0xb20] sm:$0xff]  ;;  %v192_v13 = vld [vmem:[#allocation2 + $0x3f8] sm:$0xff] }
  0x8f   :  { %800 = vmatpush1.msra.mxu1 %v123_v15  ;;  %691 = vmatprep.subr.mxu0 %v438_v16  ;;  %v418_v36 = vld [vmem:[#allocation2 + $0xb08] sm:$0xff]  ;;  %v417_v38 = vld [vmem:[#allocation2 + $0xb00] sm:$0xff]  ;;  %v256_v14 = vld [vmem:[#allocation2 + $0x5f8] sm:$0xff] }
  0x90   :  { %801 = vmatprep.subr.mxu1 %v120_v17  ;;  %692 = vmatpush2.msra.mxu0 %v437_v18  ;;  %v414_v40 = vld [vmem:[#allocation2 + $0xae8] sm:$0xff]  ;;  %v413_v42 = vld [vmem:[#allocation2 + $0xae0] sm:$0xff]  ;;  %v191_v15 = vld [vmem:[#allocation2 + $0x3f0] sm:$0xff] }
  0x91   :  { %802 = vmatpush1.msra.mxu1 %v119_v19  ;;  %693 = vmatprep.subr.mxu0 %v434_v20  ;;  %v410_v44 = vld [vmem:[#allocation2 + $0xac8] sm:$0xff]  ;;  %v409_v46 = vld [vmem:[#allocation2 + $0xac0] sm:$0xff]  ;;  %v255_v16 = vld [vmem:[#allocation2 + $0x5f0] sm:$0xff] }
  0x92   :  { %803 = vmatprep.subr.mxu1 %v116_v21  ;;  %694 = vmatpush2.msra.mxu0 %v433_v22  ;;  %v406_v48 = vld [vmem:[#allocation2 + $0xaa8] sm:$0xff]  ;;  %v405_v50 = vld [vmem:[#allocation2 + $0xaa0] sm:$0xff]  ;;  %v188_v17 = vld [vmem:[#allocation2 + $0x3d8] sm:$0xff] }
  0x93   :  { %804 = vmatpush1.msra.mxu1 %v115_v23  ;;  %695 = vmatprep.subr.mxu0 %v430_v24  ;;  %v402_v52 = vld [vmem:[#allocation2 + $0xa88] sm:$0xff]  ;;  %v401_v54 = vld [vmem:[#allocation2 + $0xa80] sm:$0xff]  ;;  %v252_v18 = vld [vmem:[#allocation2 + $0x5d8] sm:$0xff] }
  0x94   :  { %805 = vmatprep.subr.mxu1 %v112_v25  ;;  %696 = vmatpush2.msra.mxu0 %v429_v26  ;;  %v398_v56 = vld [vmem:[#allocation2 + $0xa68] sm:$0xff]  ;;  %v397_v58 = vld [vmem:[#allocation2 + $0xa60] sm:$0xff]  ;;  %v187_v19 = vld [vmem:[#allocation2 + $0x3d0] sm:$0xff] }
  0x95   :  { %806 = vmatpush1.msra.mxu1 %v111_v27  ;;  %697 = vmatprep.subr.mxu0 %v426_v28  ;;  %v394_v60 = vld [vmem:[#allocation2 + $0xa48] sm:$0xff]  ;;  %v393_v62 = vld [vmem:[#allocation2 + $0xa40] sm:$0xff]  ;;  %v251_v20 = vld [vmem:[#allocation2 + $0x5d0] sm:$0xff] }
  0x96   :  { %807 = vmatprep.subr.mxu1 %v108_v29  ;;  %698 = vmatpush2.msra.mxu0 %v425_v30  ;;  %v390_v1 = vld [vmem:[#allocation2 + $0xa28] sm:$0xff]  ;;  %v389_v4 = vld [vmem:[#allocation2 + $0xa20] sm:$0xff]  ;;  %v184_v21 = vld [vmem:[#allocation2 + $0x3b8] sm:$0xff] }
  0x97   :  { %808 = vmatpush1.msra.mxu1 %v107_v31  ;;  %699 = vmatprep.subr.mxu0 %v422_v32  ;;  %v386_v6 = vld [vmem:[#allocation2 + $0xa08] sm:$0xff]  ;;  %v385_v8 = vld [vmem:[#allocation2 + $0xa00] sm:$0xff]  ;;  %v248_v22 = vld [vmem:[#allocation2 + $0x5b8] sm:$0xff] }
  0x98   :  { %809 = vmatprep.subr.mxu1 %v104_v33  ;;  %700 = vmatpush2.msra.mxu0 %v421_v34  ;;  %v1649_v9 = vld [vmem:[%s1692_s0 + $0x28] sm:$0xff]  ;;  %v1654_v12 = vld [vmem:[%s1692_s0 + $0x20] sm:$0xff]  ;;  %v183_v23 = vld [vmem:[#allocation2 + $0x3b0] sm:$0xff] }
  0x99   :  { %810 = vmatpush1.msra.mxu1 %v103_v35  ;;  %701 = vmatprep.subr.mxu0 %v418_v36  ;;  %v247_v24 = vld [vmem:[#allocation2 + $0x5b0] sm:$0xff]  ;;  %v180_v25 = vld [vmem:[#allocation2 + $0x398] sm:$0xff] }
  0x9a   :  { %811 = vmatprep.subr.mxu1 %v100_v37  ;;  %702 = vmatpush2.msra.mxu0 %v417_v38  ;;  %v244_v26 = vld [vmem:[#allocation2 + $0x598] sm:$0xff]  ;;  %v179_v27 = vld [vmem:[#allocation2 + $0x390] sm:$0xff] }
  0x9b   :  { %812 = vmatpush1.msra.mxu1 %v99_v39  ;;  %703 = vmatprep.subr.mxu0 %v414_v40  ;;  %v243_v28 = vld [vmem:[#allocation2 + $0x590] sm:$0xff]  ;;  %v176_v29 = vld [vmem:[#allocation2 + $0x378] sm:$0xff] }
  0x9c   :  { %813 = vmatprep.subr.mxu1 %v96_v41  ;;  %704 = vmatpush2.msra.mxu0 %v413_v42  ;;  %v240_v30 = vld [vmem:[#allocation2 + $0x578] sm:$0xff]  ;;  %v175_v31 = vld [vmem:[#allocation2 + $0x370] sm:$0xff] }
  0x9d   :  { %814 = vmatpush1.msra.mxu1 %v95_v43  ;;  %705 = vmatprep.subr.mxu0 %v410_v44  ;;  %v239_v32 = vld [vmem:[#allocation2 + $0x570] sm:$0xff]  ;;  %v172_v33 = vld [vmem:[#allocation2 + $0x358] sm:$0xff] }
  0x9e   :  { %815 = vmatprep.subr.mxu1 %v92_v45  ;;  %706 = vmatpush2.msra.mxu0 %v409_v46  ;;  %v236_v34 = vld [vmem:[#allocation2 + $0x558] sm:$0xff]  ;;  %v171_v35 = vld [vmem:[#allocation2 + $0x350] sm:$0xff] }
  0x9f   :  { %816 = vmatpush1.msra.mxu1 %v91_v47  ;;  %707 = vmatprep.subr.mxu0 %v406_v48  ;;  %v235_v36 = vld [vmem:[#allocation2 + $0x550] sm:$0xff]  ;;  %v168_v37 = vld [vmem:[#allocation2 + $0x338] sm:$0xff] }
  0xa0   :  { %817 = vmatprep.subr.mxu1 %v88_v49  ;;  %708 = vmatpush2.msra.mxu0 %v405_v50  ;;  %v232_v38 = vld [vmem:[#allocation2 + $0x538] sm:$0xff]  ;;  %v167_v39 = vld [vmem:[#allocation2 + $0x330] sm:$0xff] }
  0xa1   :  { %818 = vmatpush1.msra.mxu1 %v87_v51  ;;  %709 = vmatprep.subr.mxu0 %v402_v52  ;;  %v231_v40 = vld [vmem:[#allocation2 + $0x530] sm:$0xff]  ;;  %v164_v41 = vld [vmem:[#allocation2 + $0x318] sm:$0xff] }
  0xa2   :  { %819 = vmatprep.subr.mxu1 %v84_v53  ;;  %710 = vmatpush2.msra.mxu0 %v401_v54  ;;  %v228_v42 = vld [vmem:[#allocation2 + $0x518] sm:$0xff]  ;;  %v163_v43 = vld [vmem:[#allocation2 + $0x310] sm:$0xff] }
  0xa3   :  { %820 = vmatpush1.msra.mxu1 %v83_v55  ;;  %711 = vmatprep.subr.mxu0 %v398_v56  ;;  %v227_v44 = vld [vmem:[#allocation2 + $0x510] sm:$0xff]  ;;  %v160_v45 = vld [vmem:[#allocation2 + $0x2f8] sm:$0xff] }
  0xa4   :  { %821 = vmatprep.subr.mxu1 %v80_v57  ;;  %712 = vmatpush2.msra.mxu0 %v397_v58  ;;  %v224_v46 = vld [vmem:[#allocation2 + $0x4f8] sm:$0xff]  ;;  %v159_v47 = vld [vmem:[#allocation2 + $0x2f0] sm:$0xff] }
  0xa5   :  { %822 = vmatpush1.msra.mxu1 %v79_v59  ;;  %713 = vmatprep.subr.mxu0 %v394_v60  ;;  %v223_v48 = vld [vmem:[#allocation2 + $0x4f0] sm:$0xff]  ;;  %v156_v49 = vld [vmem:[#allocation2 + $0x2d8] sm:$0xff] }
  0xa6   :  { %823 = vmatprep.subr.mxu1 %v76_v61  ;;  %714 = vmatpush2.msra.mxu0 %v393_v62  ;;  %v220_v50 = vld [vmem:[#allocation2 + $0x4d8] sm:$0xff]  ;;  %v155_v51 = vld [vmem:[#allocation2 + $0x2d0] sm:$0xff] }
  0xa7   :  { %824 = vmatpush1.msra.mxu1 %v75_v0  ;;  %715 = vmatprep.subr.mxu0 %v390_v1  ;;  %v219_v52 = vld [vmem:[#allocation2 + $0x4d0] sm:$0xff]  ;;  %v152_v53 = vld [vmem:[#allocation2 + $0x2b8] sm:$0xff] }
  0xa8   :  { %825 = vmatprep.subr.mxu1 %v72_v3  ;;  %716 = vmatpush2.msra.mxu0 %v389_v4  ;;  %v216_v54 = vld [vmem:[#allocation2 + $0x4b8] sm:$0xff]  ;;  %v151_v55 = vld [vmem:[#allocation2 + $0x2b0] sm:$0xff] }
  0xa9   :  { %826 = vmatpush1.msra.mxu1 %v71_v5  ;;  %717 = vmatprep.subr.mxu0 %v386_v6  ;;  %v215_v56 = vld [vmem:[#allocation2 + $0x4b0] sm:$0xff]  ;;  %v148_v57 = vld [vmem:[#allocation2 + $0x298] sm:$0xff] }
  0xaa   :  { %827 = vmatprep.subr.mxu1 %v68_v7  ;;  %718 = vmatpush2.msra.mxu0 %v385_v8  ;;  %v212_v58 = vld [vmem:[#allocation2 + $0x498] sm:$0xff]  ;;  %v147_v59 = vld [vmem:[#allocation2 + $0x290] sm:$0xff] }
  0xab   :  { %719 = vmatprep.mubr.f32.mxu0 %v1649_v9  ;;  %828 = vmatpush1.msra.mxu1 %v67_v10  ;;  %v211_v60 = vld [vmem:[#allocation2 + $0x490] sm:$0xff]  ;;  %v144_v61 = vld [vmem:[#allocation2 + $0x278] sm:$0xff] }
  0xac   :  { %720 = vmatmul.mubr.f32.vlgmr.msra.gmra.mxu0 %v1654_v12  ;;  %829 = vmatprep.subr.mxu1 %v192_v13  ;;  %v208_v62 = vld [vmem:[#allocation2 + $0x478] sm:$0xff]  ;;  %v143_v0 = vld [vmem:[#allocation2 + $0x270] sm:$0xff] }
  0xad   :  { %868 = vmatprep.subr.mxu0 %v256_v14  ;;  %830 = vmatpush2.msra.mxu1 %v191_v15  ;;  %v207_v1 = vld [vmem:[#allocation2 + $0x470] sm:$0xff]  ;;  %v140_v3 = vld [vmem:[#allocation2 + $0x258] sm:$0xff] }
  0xae   :  { %869 = vmatpush1.msra.mxu0 %v255_v16  ;;  %831 = vmatprep.subr.mxu1 %v188_v17  ;;  %v204_v4 = vld [vmem:[#allocation2 + $0x458] sm:$0xff]  ;;  %v139_v5 = vld [vmem:[#allocation2 + $0x250] sm:$0xff] }
  0xaf   :  { %870 = vmatprep.subr.mxu0 %v252_v18  ;;  %832 = vmatpush2.msra.mxu1 %v187_v19  ;;  %v203_v6 = vld [vmem:[#allocation2 + $0x450] sm:$0xff]  ;;  %v136_v7 = vld [vmem:[#allocation2 + $0x238] sm:$0xff] }
  0xb0   :  { %871 = vmatpush1.msra.mxu0 %v251_v20  ;;  %833 = vmatprep.subr.mxu1 %v184_v21  ;;  %v200_v8 = vld [vmem:[#allocation2 + $0x438] sm:$0xff]  ;;  %v135_v10 = vld [vmem:[#allocation2 + $0x230] sm:$0xff] }
  0xb1   :  { %872 = vmatprep.subr.mxu0 %v248_v22  ;;  %834 = vmatpush2.msra.mxu1 %v183_v23  ;;  %v199_v13 = vld [vmem:[#allocation2 + $0x430] sm:$0xff]  ;;  %v132_v14 = vld [vmem:[#allocation2 + $0x218] sm:$0xff] }
  0xb2   :  { %873 = vmatpush1.msra.mxu0 %v247_v24  ;;  %835 = vmatprep.subr.mxu1 %v180_v25  ;;  %v196_v15 = vld [vmem:[#allocation2 + $0x418] sm:$0xff]  ;;  %v131_v16 = vld [vmem:[#allocation2 + $0x210] sm:$0xff] }
  0xb3   :  { %874 = vmatprep.subr.mxu0 %v244_v26  ;;  %836 = vmatpush2.msra.mxu1 %v179_v27  ;;  %v195_v17 = vld [vmem:[#allocation2 + $0x410] sm:$0xff]  ;;  %v320_v18 = vld [vmem:[#allocation2 + $0x7f8] sm:$0xff] }
  0xb4   :  { %875 = vmatpush1.msra.mxu0 %v243_v28  ;;  %837 = vmatprep.subr.mxu1 %v176_v29  ;;  %v384_v19 = vld [vmem:[#allocation2 + $0x9f8] sm:$0xff]  ;;  %v319_v20 = vld [vmem:[#allocation2 + $0x7f0] sm:$0xff] }
  0xb5   :  { %876 = vmatprep.subr.mxu0 %v240_v30  ;;  %838 = vmatpush2.msra.mxu1 %v175_v31  ;;  %v383_v21 = vld [vmem:[#allocation2 + $0x9f0] sm:$0xff]  ;;  %v316_v22 = vld [vmem:[#allocation2 + $0x7d8] sm:$0xff] }
  0xb6   :  { %877 = vmatpush1.msra.mxu0 %v239_v32  ;;  %839 = vmatprep.subr.mxu1 %v172_v33  ;;  %v380_v23 = vld [vmem:[#allocation2 + $0x9d8] sm:$0xff]  ;;  %v315_v24 = vld [vmem:[#allocation2 + $0x7d0] sm:$0xff] }
  0xb7   :  { %878 = vmatprep.subr.mxu0 %v236_v34  ;;  %840 = vmatpush2.msra.mxu1 %v171_v35  ;;  %v379_v25 = vld [vmem:[#allocation2 + $0x9d0] sm:$0xff]  ;;  %v312_v26 = vld [vmem:[#allocation2 + $0x7b8] sm:$0xff] }
  0xb8   :  { %879 = vmatpush1.msra.mxu0 %v235_v36  ;;  %841 = vmatprep.subr.mxu1 %v168_v37  ;;  %v376_v27 = vld [vmem:[#allocation2 + $0x9b8] sm:$0xff]  ;;  %v311_v28 = vld [vmem:[#allocation2 + $0x7b0] sm:$0xff] }
  0xb9   :  { %880 = vmatprep.subr.mxu0 %v232_v38  ;;  %842 = vmatpush2.msra.mxu1 %v167_v39  ;;  %v375_v29 = vld [vmem:[#allocation2 + $0x9b0] sm:$0xff]  ;;  %v372_v30 = vld [vmem:[#allocation2 + $0x998] sm:$0xff] }
  0xba   :  { %881 = vmatpush1.msra.mxu0 %v231_v40  ;;  %843 = vmatprep.subr.mxu1 %v164_v41  ;;  %v371_v31 = vld [vmem:[#allocation2 + $0x990] sm:$0xff]  ;;  %v304_v32 = vld [vmem:[#allocation2 + $0x778] sm:$0xff] }
  0xbb   :  { %882 = vmatprep.subr.mxu0 %v228_v42  ;;  %844 = vmatpush2.msra.mxu1 %v163_v43  ;;  %v368_v33 = vld [vmem:[#allocation2 + $0x978] sm:$0xff]  ;;  %v303_v34 = vld [vmem:[#allocation2 + $0x770] sm:$0xff] }
  0xbc   :  { %883 = vmatpush1.msra.mxu0 %v227_v44  ;;  %845 = vmatprep.subr.mxu1 %v160_v45  ;;  %v367_v35 = vld [vmem:[#allocation2 + $0x970] sm:$0xff]  ;;  %v300_v36 = vld [vmem:[#allocation2 + $0x758] sm:$0xff] }
  0xbd   :  { %884 = vmatprep.subr.mxu0 %v224_v46  ;;  %846 = vmatpush2.msra.mxu1 %v159_v47  ;;  %v364_v37 = vld [vmem:[#allocation2 + $0x958] sm:$0xff]  ;;  %v299_v38 = vld [vmem:[#allocation2 + $0x750] sm:$0xff] }
  0xbe   :  { %885 = vmatpush1.msra.mxu0 %v223_v48  ;;  %847 = vmatprep.subr.mxu1 %v156_v49  ;;  %v363_v39 = vld [vmem:[#allocation2 + $0x950] sm:$0xff]  ;;  %v296_v40 = vld [vmem:[#allocation2 + $0x738] sm:$0xff] }
  0xbf   :  { %886 = vmatprep.subr.mxu0 %v220_v50  ;;  %848 = vmatpush2.msra.mxu1 %v155_v51  ;;  %v360_v41 = vld [vmem:[#allocation2 + $0x938] sm:$0xff]  ;;  %v295_v42 = vld [vmem:[#allocation2 + $0x730] sm:$0xff] }
  0xc0   :  { %887 = vmatpush1.msra.mxu0 %v219_v52  ;;  %849 = vmatprep.subr.mxu1 %v152_v53  ;;  %v359_v43 = vld [vmem:[#allocation2 + $0x930] sm:$0xff]  ;;  %v292_v44 = vld [vmem:[#allocation2 + $0x718] sm:$0xff] }
  0xc1   :  { %888 = vmatprep.subr.mxu0 %v216_v54  ;;  %850 = vmatpush2.msra.mxu1 %v151_v55  ;;  %v356_v45 = vld [vmem:[#allocation2 + $0x918] sm:$0xff]  ;;  %v291_v46 = vld [vmem:[#allocation2 + $0x710] sm:$0xff] }
  0xc2   :  { %889 = vmatpush1.msra.mxu0 %v215_v56  ;;  %851 = vmatprep.subr.mxu1 %v148_v57  ;;  %v355_v47 = vld [vmem:[#allocation2 + $0x910] sm:$0xff]  ;;  %v288_v48 = vld [vmem:[#allocation2 + $0x6f8] sm:$0xff] }
  0xc3   :  { %890 = vmatprep.subr.mxu0 %v212_v58  ;;  %852 = vmatpush2.msra.mxu1 %v147_v59  ;;  %v352_v49 = vld [vmem:[#allocation2 + $0x8f8] sm:$0xff]  ;;  %v287_v50 = vld [vmem:[#allocation2 + $0x6f0] sm:$0xff] }
  0xc4   :  { %891 = vmatpush1.msra.mxu0 %v211_v60  ;;  %853 = vmatprep.subr.mxu1 %v144_v61  ;;  %v351_v51 = vld [vmem:[#allocation2 + $0x8f0] sm:$0xff]  ;;  %v284_v52 = vld [vmem:[#allocation2 + $0x6d8] sm:$0xff] }
  0xc5   :  { %892 = vmatprep.subr.mxu0 %v208_v62  ;;  %854 = vmatpush2.msra.mxu1 %v143_v0  ;;  %v348_v53 = vld [vmem:[#allocation2 + $0x8d8] sm:$0xff]  ;;  %v283_v54 = vld [vmem:[#allocation2 + $0x6d0] sm:$0xff] }
  0xc6   :  { %893 = vmatpush1.msra.mxu0 %v207_v1  ;;  %855 = vmatprep.subr.mxu1 %v140_v3  ;;  %v347_v55 = vld [vmem:[#allocation2 + $0x8d0] sm:$0xff]  ;;  %v280_v56 = vld [vmem:[#allocation2 + $0x6b8] sm:$0xff] }
  0xc7   :  { %894 = vmatprep.subr.mxu0 %v204_v4  ;;  %856 = vmatpush2.msra.mxu1 %v139_v5  ;;  %v344_v57 = vld [vmem:[#allocation2 + $0x8b8] sm:$0xff]  ;;  %v279_v58 = vld [vmem:[#allocation2 + $0x6b0] sm:$0xff] }
  0xc8   :  { %895 = vmatpush1.msra.mxu0 %v203_v6  ;;  %857 = vmatprep.subr.mxu1 %v136_v7  ;;  %v343_v59 = vld [vmem:[#allocation2 + $0x8b0] sm:$0xff]  ;;  %v276_v60 = vld [vmem:[#allocation2 + $0x698] sm:$0xff] }
  0xc9   :  { %896 = vmatprep.subr.mxu0 %v200_v8  ;;  %858 = vmatpush2.msra.mxu1 %v135_v10  ;;  %v340_v61 = vld [vmem:[#allocation2 + $0x898] sm:$0xff]  ;;  %v275_v62 = vld [vmem:[#allocation2 + $0x690] sm:$0xff] }
  0xca   :  { %897 = vmatpush1.msra.mxu0 %v199_v13  ;;  %859 = vmatprep.subr.mxu1 %v132_v14  ;;  %v339_v0 = vld [vmem:[#allocation2 + $0x890] sm:$0xff]  ;;  %v272_v1 = vld [vmem:[#allocation2 + $0x678] sm:$0xff] }
  0xcb   :  { %898 = vmatprep.subr.mxu0 %v196_v15  ;;  %860 = vmatpush2.msra.mxu1 %v131_v16  ;;  %v336_v3 = vld [vmem:[#allocation2 + $0x878] sm:$0xff]  ;;  %v271_v4 = vld [vmem:[#allocation2 + $0x670] sm:$0xff] }
  0xcc   :  { %861 = vmatprep.mubr.f32.mxu1 %v1627_v63  ;;  %899 = vmatpush1.msra.mxu0 %v195_v17  ;;  %v308_v63 = vld [vmem:[#allocation2 + $0x798] sm:$0xff]  ;;  %v335_v5 = vld [vmem:[#allocation2 + $0x870] sm:$0xff] }
  0xcd   :  { %862 = vmatmul.mubr.f32.vlgmr.msra.gmra.mxu1 %v1635_v2  ;;  %900 = vmatprep.subr.mxu0 %v320_v18  ;;  %v307_v2 = vld [vmem:[#allocation2 + $0x790] sm:$0xff]  ;;  %v268_v6 = vld [vmem:[#allocation2 + $0x658] sm:$0xff] }
  0xce   :  { %939 = vmatprep.subr.mxu1 %v384_v19  ;;  %901 = vmatpush2.msra.mxu0 %v319_v20  ;;  %v332_v7 = vld [vmem:[#allocation2 + $0x858] sm:$0xff]  ;;  %v267_v8 = vld [vmem:[#allocation2 + $0x650] sm:$0xff] }
  0xcf   :  { %940 = vmatpush1.msra.mxu1 %v383_v21  ;;  %902 = vmatprep.subr.mxu0 %v316_v22  ;;  %v331_v10 = vld [vmem:[#allocation2 + $0x850] sm:$0xff]  ;;  %v264_v13 = vld [vmem:[#allocation2 + $0x638] sm:$0xff] }
  0xd0   :  { %941 = vmatprep.subr.mxu1 %v380_v23  ;;  %903 = vmatpush2.msra.mxu0 %v315_v24  ;;  %v328_v14 = vld [vmem:[#allocation2 + $0x838] sm:$0xff]  ;;  %v263_v15 = vld [vmem:[#allocation2 + $0x630] sm:$0xff] }
  0xd1   :  { %942 = vmatpush1.msra.mxu1 %v379_v25  ;;  %904 = vmatprep.subr.mxu0 %v312_v26  ;;  %v327_v16 = vld [vmem:[#allocation2 + $0x830] sm:$0xff]  ;;  %v260_v17 = vld [vmem:[#allocation2 + $0x618] sm:$0xff] }
  0xd2   :  { %943 = vmatprep.subr.mxu1 %v376_v27  ;;  %905 = vmatpush2.msra.mxu0 %v311_v28  ;;  %v324_v18 = vld [vmem:[#allocation2 + $0x818] sm:$0xff]  ;;  %v259_v19 = vld [vmem:[#allocation2 + $0x610] sm:$0xff] }
  0xd3   :  { %944 = vmatpush1.msra.mxu1 %v375_v29  ;;  %906 = vmatprep.subr.mxu0 %v308_v63  ;;  %v323_v20 = vld [vmem:[#allocation2 + $0x810] sm:$0xff]  ;;  %v448_v21 = vld [vmem:[#allocation2 + $0xbf8] sm:$0xff] }
  0xd4   :  { %945 = vmatprep.subr.mxu1 %v372_v30  ;;  %907 = vmatpush2.msra.mxu0 %v307_v2  ;;  %v512_v22 = vld [vmem:[#allocation2 + $0xdf8] sm:$0xff]  ;;  %v447_v24 = vld [vmem:[#allocation2 + $0xbf0] sm:$0xff] }
  0xd5   :  { %946 = vmatpush1.msra.mxu1 %v371_v31  ;;  %908 = vmatprep.subr.mxu0 %v304_v32  ;;  %v1514_v23 = vld [vmem:[%s1692_s0 + $0x18] sm:$0xff]  ;;  %v511_v25 = vld [vmem:[#allocation2 + $0xdf0] sm:$0xff] }
  0xd6   :  { %947 = vmatprep.subr.mxu1 %v368_v33  ;;  %909 = vmatpush2.msra.mxu0 %v303_v34  ;;  %v1515_v26 = vld [vmem:[%s1692_s0 + $0x10] sm:$0xff]  ;;  %v444_v27 = vld [vmem:[#allocation2 + $0xbd8] sm:$0xff] }
  0xd7   :  { %948 = vmatpush1.msra.mxu1 %v367_v35  ;;  %910 = vmatprep.subr.mxu0 %v300_v36  ;;  %v508_v28 = vld [vmem:[#allocation2 + $0xdd8] sm:$0xff]  ;;  %v443_v29 = vld [vmem:[#allocation2 + $0xbd0] sm:$0xff] }
  0xd8   :  { %949 = vmatprep.subr.mxu1 %v364_v37  ;;  %911 = vmatpush2.msra.mxu0 %v299_v38  ;;  %v507_v63 = vld [vmem:[#allocation2 + $0xdd0] sm:$0xff]  ;;  %v440_v30 = vld [vmem:[#allocation2 + $0xbb8] sm:$0xff] }
  0xd9   :  { %950 = vmatpush1.msra.mxu1 %v363_v39  ;;  %912 = vmatprep.subr.mxu0 %v296_v40  ;;  %v504_v2 = vld [vmem:[#allocation2 + $0xdb8] sm:$0xff]  ;;  %v439_v31 = vld [vmem:[#allocation2 + $0xbb0] sm:$0xff] }
  0xda   :  { %951 = vmatprep.subr.mxu1 %v360_v41  ;;  %913 = vmatpush2.msra.mxu0 %v295_v42  ;;  %v503_v32 = vld [vmem:[#allocation2 + $0xdb0] sm:$0xff]  ;;  %v436_v33 = vld [vmem:[#allocation2 + $0xb98] sm:$0xff] }
  0xdb   :  { %952 = vmatpush1.msra.mxu1 %v359_v43  ;;  %914 = vmatprep.subr.mxu0 %v292_v44  ;;  %v500_v34 = vld [vmem:[#allocation2 + $0xd98] sm:$0xff]  ;;  %v435_v35 = vld [vmem:[#allocation2 + $0xb90] sm:$0xff] }
  0xdc   :  { %953 = vmatprep.subr.mxu1 %v356_v45  ;;  %915 = vmatpush2.msra.mxu0 %v291_v46  ;;  %v499_v36 = vld [vmem:[#allocation2 + $0xd90] sm:$0xff]  ;;  %v432_v37 = vld [vmem:[#allocation2 + $0xb78] sm:$0xff] }
  0xdd   :  { %954 = vmatpush1.msra.mxu1 %v355_v47  ;;  %916 = vmatprep.subr.mxu0 %v288_v48  ;;  %v496_v38 = vld [vmem:[#allocation2 + $0xd78] sm:$0xff]  ;;  %v431_v39 = vld [vmem:[#allocation2 + $0xb70] sm:$0xff] }
  0xde   :  { %955 = vmatprep.subr.mxu1 %v352_v49  ;;  %917 = vmatpush2.msra.mxu0 %v287_v50  ;;  %v495_v40 = vld [vmem:[#allocation2 + $0xd70] sm:$0xff]  ;;  %v428_v41 = vld [vmem:[#allocation2 + $0xb58] sm:$0xff] }
  0xdf   :  { %956 = vmatpush1.msra.mxu1 %v351_v51  ;;  %918 = vmatprep.subr.mxu0 %v284_v52  ;;  %v492_v42 = vld [vmem:[#allocation2 + $0xd58] sm:$0xff]  ;;  %v427_v43 = vld [vmem:[#allocation2 + $0xb50] sm:$0xff] }
  0xe0   :  { %957 = vmatprep.subr.mxu1 %v348_v53  ;;  %919 = vmatpush2.msra.mxu0 %v283_v54  ;;  %v491_v44 = vld [vmem:[#allocation2 + $0xd50] sm:$0xff]  ;;  %v424_v45 = vld [vmem:[#allocation2 + $0xb38] sm:$0xff] }
  0xe1   :  { %958 = vmatpush1.msra.mxu1 %v347_v55  ;;  %920 = vmatprep.subr.mxu0 %v280_v56  ;;  %v488_v46 = vld [vmem:[#allocation2 + $0xd38] sm:$0xff]  ;;  %v423_v47 = vld [vmem:[#allocation2 + $0xb30] sm:$0xff] }
  0xe2   :  { %959 = vmatprep.subr.mxu1 %v344_v57  ;;  %921 = vmatpush2.msra.mxu0 %v279_v58  ;;  %v487_v48 = vld [vmem:[#allocation2 + $0xd30] sm:$0xff]  ;;  %v420_v49 = vld [vmem:[#allocation2 + $0xb18] sm:$0xff] }
  0xe3   :  { %960 = vmatpush1.msra.mxu1 %v343_v59  ;;  %922 = vmatprep.subr.mxu0 %v276_v60  ;;  %v484_v50 = vld [vmem:[#allocation2 + $0xd18] sm:$0xff]  ;;  %v419_v51 = vld [vmem:[#allocation2 + $0xb10] sm:$0xff] }
  0xe4   :  { %961 = vmatprep.subr.mxu1 %v340_v61  ;;  %923 = vmatpush2.msra.mxu0 %v275_v62  ;;  %v483_v52 = vld [vmem:[#allocation2 + $0xd10] sm:$0xff]  ;;  %v416_v53 = vld [vmem:[#allocation2 + $0xaf8] sm:$0xff] }
  0xe5   :  { %962 = vmatpush1.msra.mxu1 %v339_v0  ;;  %924 = vmatprep.subr.mxu0 %v272_v1  ;;  %v480_v54 = vld [vmem:[#allocation2 + $0xcf8] sm:$0xff]  ;;  %v415_v55 = vld [vmem:[#allocation2 + $0xaf0] sm:$0xff] }
  0xe6   :  { %963 = vmatprep.subr.mxu1 %v336_v3  ;;  %925 = vmatpush2.msra.mxu0 %v271_v4  ;;  %v479_v56 = vld [vmem:[#allocation2 + $0xcf0] sm:$0xff]  ;;  %v412_v57 = vld [vmem:[#allocation2 + $0xad8] sm:$0xff] }
  0xe7   :  { %964 = vmatpush1.msra.mxu1 %v335_v5  ;;  %926 = vmatprep.subr.mxu0 %v268_v6  ;;  %v476_v58 = vld [vmem:[#allocation2 + $0xcd8] sm:$0xff]  ;;  %v411_v59 = vld [vmem:[#allocation2 + $0xad0] sm:$0xff] }
  0xe8   :  { %965 = vmatprep.subr.mxu1 %v332_v7  ;;  %927 = vmatpush2.msra.mxu0 %v267_v8  ;;  %v475_v60 = vld [vmem:[#allocation2 + $0xcd0] sm:$0xff]  ;;  %v408_v61 = vld [vmem:[#allocation2 + $0xab8] sm:$0xff] }
  0xe9   :  { %966 = vmatpush1.msra.mxu1 %v331_v10  ;;  %928 = vmatprep.subr.mxu0 %v264_v13  ;;  %v472_v62 = vld [vmem:[#allocation2 + $0xcb8] sm:$0xff]  ;;  %v407_v0 = vld [vmem:[#allocation2 + $0xab0] sm:$0xff] }
  0xea   :  { %967 = vmatprep.subr.mxu1 %v328_v14  ;;  %929 = vmatpush2.msra.mxu0 %v263_v15  ;;  %v471_v1 = vld [vmem:[#allocation2 + $0xcb0] sm:$0xff]  ;;  %v404_v3 = vld [vmem:[#allocation2 + $0xa98] sm:$0xff] }
  0xeb   :  { %968 = vmatpush1.msra.mxu1 %v327_v16  ;;  %930 = vmatprep.subr.mxu0 %v260_v17  ;;  %v468_v4 = vld [vmem:[#allocation2 + $0xc98] sm:$0xff]  ;;  %v403_v5 = vld [vmem:[#allocation2 + $0xa90] sm:$0xff] }
  0xec   :  { %969 = vmatprep.subr.mxu1 %v324_v18  ;;  %931 = vmatpush2.msra.mxu0 %v259_v19  ;;  %v467_v6 = vld [vmem:[#allocation2 + $0xc90] sm:$0xff]  ;;  %v400_v7 = vld [vmem:[#allocation2 + $0xa78] sm:$0xff] }
  0xed   :  { %932 = vmatprep.mubr.f32.mxu0 %v1514_v23  ;;  %970 = vmatpush1.msra.mxu1 %v323_v20  ;;  %v464_v8 = vld [vmem:[#allocation2 + $0xc78] sm:$0xff]  ;;  %v399_v10 = vld [vmem:[#allocation2 + $0xa70] sm:$0xff] }
  0xee   :  { %933 = vmatmul.mubr.f32.vlgmr.msra.gmra.mxu0 %v1515_v26  ;;  %971 = vmatprep.subr.mxu1 %v448_v21  ;;  %v463_v13 = vld [vmem:[#allocation2 + $0xc70] sm:$0xff]  ;;  %v396_v14 = vld [vmem:[#allocation2 + $0xa58] sm:$0xff] }
  0xef   :  { %1010 = vmatprep.subr.mxu0 %v512_v22  ;;  %972 = vmatpush2.msra.mxu1 %v447_v24  ;;  %v460_v15 = vld [vmem:[#allocation2 + $0xc58] sm:$0xff]  ;;  %v395_v16 = vld [vmem:[#allocation2 + $0xa50] sm:$0xff] }
  0xf0   :  { %1011 = vmatpush1.msra.mxu0 %v511_v25  ;;  %973 = vmatprep.subr.mxu1 %v444_v27  ;;  %v459_v17 = vld [vmem:[#allocation2 + $0xc50] sm:$0xff]  ;;  %v392_v18 = vld [vmem:[#allocation2 + $0xa38] sm:$0xff] }
  0xf1   :  { %1012 = vmatprep.subr.mxu0 %v508_v28  ;;  %974 = vmatpush2.msra.mxu1 %v443_v29  ;;  %v456_v19 = vld [vmem:[#allocation2 + $0xc38] sm:$0xff]  ;;  %v391_v20 = vld [vmem:[#allocation2 + $0xa30] sm:$0xff] }
  0xf2   :  { %1013 = vmatpush1.msra.mxu0 %v507_v63  ;;  %975 = vmatprep.subr.mxu1 %v440_v30  ;;  %v455_v21 = vld [vmem:[#allocation2 + $0xc30] sm:$0xff]  ;;  %v388_v22 = vld [vmem:[#allocation2 + $0xa18] sm:$0xff]  ;;  %v1114_v30 = vld [vmem:[#allocation4 + $0xe8] sm:$0xff] }
  0xf3   :  { %1014 = vmatprep.subr.mxu0 %v504_v2  ;;  %976 = vmatpush2.msra.mxu1 %v439_v31  ;;  %v452_v23 = vld [vmem:[#allocation2 + $0xc18] sm:$0xff]  ;;  %v387_v24 = vld [vmem:[#allocation2 + $0xa10] sm:$0xff]  ;;  %v1098_v2 = vld [vmem:[#allocation4 + $0x68] sm:$0xff] }
  0xf4   :  { %1015 = vmatpush1.msra.mxu0 %v503_v32  ;;  %977 = vmatprep.subr.mxu1 %v436_v33  ;;  %v451_v25 = vld [vmem:[#allocation2 + $0xc10] sm:$0xff]  ;;  %v1116_v26 = vld [vmem:[#allocation4 + $0xf8] sm:$0xff]  ;;  %v1097_v31 = vld [vmem:[#allocation4 + $0x60] sm:$0xff] }
  0xf5   :  { %1016 = vmatprep.subr.mxu0 %v500_v34  ;;  %978 = vmatpush2.msra.mxu1 %v435_v35  ;;  %v1100_v27 = vld [vmem:[#allocation4 + $0x78] sm:$0xff]  ;;  %v1516_v28 = vld [vmem:[%s1692_s0 + $0x30] sm:$0xff]  ;;  %v1110_v35 = vld [vmem:[#allocation4 + $0xc8] sm:$0xff] }
  0xf6   :  { %1017 = vmatpush1.msra.mxu0 %v499_v36  ;;  %979 = vmatprep.subr.mxu1 %v432_v37  ;;  %v1115_v29 = vld [vmem:[#allocation4 + $0xf0] sm:$0xff]  ;;  %v1112_v32 = vld [vmem:[#allocation4 + $0xd8] sm:$0xff]  ;;  %v1094_v36 = vld [vmem:[#allocation4 + $0x48] sm:$0xff] }
  0xf7   :  { %1018 = vmatprep.subr.mxu0 %v496_v38  ;;  %980 = vmatpush2.msra.mxu1 %v431_v39  ;;  %v1099_v63 = vld [vmem:[#allocation4 + $0x70] sm:$0xff]  ;;  %v1109_v37 = vld [vmem:[#allocation4 + $0xc0] sm:$0xff]  ;;  %v1108_v39 = vld [vmem:[#allocation4 + $0xb8] sm:$0xff] }
  0xf8   :  { %1019 = vmatpush1.msra.mxu0 %v495_v40  ;;  %981 = vmatprep.subr.mxu1 %v428_v41  ;;  %v1111_v33 = vld [vmem:[#allocation4 + $0xd0] sm:$0xff]  ;;  %v1093_v38 = vld [vmem:[#allocation4 + $0x40] sm:$0xff]  ;;  %v1092_v40 = vld [vmem:[#allocation4 + $0x38] sm:$0xff] }
  0xf9   :  { %1020 = vmatprep.subr.mxu0 %v492_v42  ;;  %982 = vmatpush2.msra.mxu1 %v427_v43  ;;  %v1095_v34 = vld [vmem:[#allocation4 + $0x50] sm:$0xff]  ;;  %v1106_v43 = vld [vmem:[#allocation4 + $0xa8] sm:$0xff] }
  0xfa   :  { %1021 = vmatpush1.msra.mxu0 %v491_v44  ;;  %983 = vmatprep.subr.mxu1 %v424_v45  ;;  %v1107_v41 = vld [vmem:[#allocation4 + $0xb0] sm:$0xff]  ;;  %v1090_v44 = vld [vmem:[#allocation4 + $0x28] sm:$0xff]  ;;  %v1105_v45 = vld [vmem:[#allocation4 + $0xa0] sm:$0xff] }
  0xfb   :  { %1022 = vmatprep.subr.mxu0 %v488_v46  ;;  %984 = vmatpush2.msra.mxu1 %v423_v47  ;;  %v1091_v42 = vld [vmem:[#allocation4 + $0x30] sm:$0xff]  ;;  %v1089_v46 = vld [vmem:[#allocation4 + $0x20] sm:$0xff]  ;;  %v1104_v47 = vld [vmem:[#allocation4 + $0x98] sm:$0xff] }
  0xfc   :  { %1023 = vmatpush1.msra.mxu0 %v487_v48  ;;  %985 = vmatprep.subr.mxu1 %v420_v49  ;;  %v1088_v48 = vld [vmem:[#allocation4 + $0x18] sm:$0xff]  ;;  %v1103_v49 = vld [vmem:[#allocation4 + $0x90] sm:$0xff] }
  0xfd   :  { %1024 = vmatprep.subr.mxu0 %v484_v50  ;;  %986 = vmatpush2.msra.mxu1 %v419_v51  ;;  %v1087_v50 = vld [vmem:[#allocation4 + $0x10] sm:$0xff]  ;;  %v1102_v51 = vld [vmem:[#allocation4 + $0x88] sm:$0xff] }
  0xfe   :  { %1025 = vmatpush1.msra.mxu0 %v483_v52  ;;  %987 = vmatprep.subr.mxu1 %v416_v53  ;;  %v1086_v52 = vld [vmem:[#allocation4 + $0x8] sm:$0xff]  ;;  %v1101_v53 = vld [vmem:[#allocation4 + $0x80] sm:$0xff] }
  0xff   :  { %1026 = vmatprep.subr.mxu0 %v480_v54  ;;  %988 = vmatpush2.msra.mxu1 %v415_v55  ;;  %v1085_v54 = vld [vmem:[#allocation4] sm:$0xff]  ;;  %v1148_v55 = vld [vmem:[#allocation4 + $0x1f8] sm:$0xff] }
 0x100   :  { %1027 = vmatpush1.msra.mxu0 %v479_v56  ;;  %989 = vmatprep.subr.mxu1 %v412_v57  ;;  %v1132_v56 = vld [vmem:[#allocation4 + $0x178] sm:$0xff]  ;;  %v1147_v57 = vld [vmem:[#allocation4 + $0x1f0] sm:$0xff] }
 0x101   :  { %1028 = vmatprep.subr.mxu0 %v476_v58  ;;  %990 = vmatpush2.msra.mxu1 %v411_v59  ;;  %v1131_v58 = vld [vmem:[#allocation4 + $0x170] sm:$0xff]  ;;  %v1146_v59 = vld [vmem:[#allocation4 + $0x1e8] sm:$0xff] }
 0x102   :  { %1029 = vmatpush1.msra.mxu0 %v475_v60  ;;  %991 = vmatprep.subr.mxu1 %v408_v61  ;;  %v1130_v60 = vld [vmem:[#allocation4 + $0x168] sm:$0xff]  ;;  %v1145_v61 = vld [vmem:[#allocation4 + $0x1e0] sm:$0xff] }
 0x103   :  { %1030 = vmatprep.subr.mxu0 %v472_v62  ;;  %992 = vmatpush2.msra.mxu1 %v407_v0  ;;  %v1129_v62 = vld [vmem:[#allocation4 + $0x160] sm:$0xff]  ;;  %v1144_v0 = vld [vmem:[#allocation4 + $0x1d8] sm:$0xff] }
 0x104   :  { %1031 = vmatpush1.msra.mxu0 %v471_v1  ;;  %993 = vmatprep.subr.mxu1 %v404_v3  ;;  %v1128_v1 = vld [vmem:[#allocation4 + $0x158] sm:$0xff]  ;;  %v1143_v3 = vld [vmem:[#allocation4 + $0x1d0] sm:$0xff] }
 0x105   :  { %1032 = vmatprep.subr.mxu0 %v468_v4  ;;  %994 = vmatpush2.msra.mxu1 %v403_v5  ;;  %v1127_v4 = vld [vmem:[#allocation4 + $0x150] sm:$0xff]  ;;  %v1142_v5 = vld [vmem:[#allocation4 + $0x1c8] sm:$0xff] }
 0x106   :  { %1033 = vmatpush1.msra.mxu0 %v467_v6  ;;  %995 = vmatprep.subr.mxu1 %v400_v7  ;;  %v1126_v6 = vld [vmem:[#allocation4 + $0x148] sm:$0xff]  ;;  %v1141_v7 = vld [vmem:[#allocation4 + $0x1c0] sm:$0xff] }
 0x107   :  { %1034 = vmatprep.subr.mxu0 %v464_v8  ;;  %996 = vmatpush2.msra.mxu1 %v399_v10  ;;  %v1125_v8 = vld [vmem:[#allocation4 + $0x140] sm:$0xff]  ;;  %v1140_v10 = vld [vmem:[#allocation4 + $0x1b8] sm:$0xff] }
 0x108   :  { %1035 = vmatpush1.msra.mxu0 %v463_v13  ;;  %997 = vmatprep.subr.mxu1 %v396_v14  ;;  %v1124_v13 = vld [vmem:[#allocation4 + $0x138] sm:$0xff]  ;;  %v1139_v14 = vld [vmem:[#allocation4 + $0x1b0] sm:$0xff] }
 0x109   :  { %1036 = vmatprep.subr.mxu0 %v460_v15  ;;  %998 = vmatpush2.msra.mxu1 %v395_v16  ;;  %v1123_v15 = vld [vmem:[#allocation4 + $0x130] sm:$0xff]  ;;  %v1138_v16 = vld [vmem:[#allocation4 + $0x1a8] sm:$0xff] }
 0x10a   :  { %1037 = vmatpush1.msra.mxu0 %v459_v17  ;;  %999 = vmatprep.subr.mxu1 %v392_v18  ;;  %v1122_v17 = vld [vmem:[#allocation4 + $0x128] sm:$0xff]  ;;  %v1137_v18 = vld [vmem:[#allocation4 + $0x1a0] sm:$0xff] }
 0x10b   :  { %1038 = vmatprep.subr.mxu0 %v456_v19  ;;  %1000 = vmatpush2.msra.mxu1 %v391_v20  ;;  %v1121_v19 = vld [vmem:[#allocation4 + $0x120] sm:$0xff]  ;;  %v1136_v20 = vld [vmem:[#allocation4 + $0x198] sm:$0xff] }
 0x10c   :  { %1039 = vmatpush1.msra.mxu0 %v455_v21  ;;  %1001 = vmatprep.subr.mxu1 %v388_v22  ;;  %v1120_v21 = vld [vmem:[#allocation4 + $0x118] sm:$0xff]  ;;  %v1135_v22 = vld [vmem:[#allocation4 + $0x190] sm:$0xff] }
 0x10d   :  { %1040 = vmatprep.subr.mxu0 %v452_v23  ;;  %1002 = vmatpush2.msra.mxu1 %v387_v24  ;;  %v1119_v23 = vld [vmem:[#allocation4 + $0x110] sm:$0xff]  ;;  %v1134_v24 = vld [vmem:[#allocation4 + $0x188] sm:$0xff] }
 0x10e   :  { %1003 = vmatprep.mubr.f32.mxu1 %v1649_v9  ;;  %1041 = vmatpush1.msra.mxu0 %v451_v25  ;;  %v1113_v9 = vld [vmem:[#allocation4 + $0xe0] sm:$0xff]  ;;  %v1118_v25 = vld [vmem:[#allocation4 + $0x108] sm:$0xff] }
 0x10f   :  { %1074 = vmatprep.mubr.f32.mxu0 %v1588_v11  ;;  %1004 = vmatmul.mubr.f32.vlgmr.msra.gmra.mxu1 %v1654_v12  ;;  %v1096_v12 = vld [vmem:[#allocation4 + $0x58] sm:$0xff] }
 0x110   :  { %1075 = vmatmul.mubr.f32.vlgmr.msra.gmra.mxu0 %v1516_v28  ;;  %1383 = vmatprep.subr.mxu0 %v1116_v26  ;;  %v1133_v26 = vld [vmem:[#allocation4 + $0x180] sm:$0xff] }
 0x111   :  { %1384 = vmatpush3.msra.mxu0 %v1100_v27  ;;  %1418 = vmatprep.subr.mxu1 %v1148_v55  ;;  %v1117_v27 = vld [vmem:[#allocation4 + $0x100] sm:$0xff] }
 0x112   :  { %1385 = vmatprep.subr.mxu0 %v1115_v29  ;;  %1419 = vmatpush3.msra.mxu1 %v1132_v56 }
 0x113   :  { %1386 = vmatpush3.msra.mxu0 %v1099_v63  ;;  %1420 = vmatprep.subr.mxu1 %v1147_v57 }
 0x114   :  { %1387 = vmatprep.subr.mxu0 %v1114_v30  ;;  %1421 = vmatpush3.msra.mxu1 %v1131_v58 }
 0x115   :  { %1388 = vmatpush3.msra.mxu0 %v1098_v2  ;;  %1422 = vmatprep.subr.mxu1 %v1146_v59 }
 0x116   :  { %1389 = vmatprep.subr.mxu0 %v1113_v9  ;;  %1423 = vmatpush3.msra.mxu1 %v1130_v60 }
 0x117   :  { %1390 = vmatpush3.msra.mxu0 %v1097_v31  ;;  %1424 = vmatprep.subr.mxu1 %v1145_v61 }
 0x118   :  { %1391 = vmatprep.subr.mxu0 %v1112_v32  ;;  %1425 = vmatpush3.msra.mxu1 %v1129_v62 }
 0x119   :  { %1392 = vmatpush3.msra.mxu0 %v1096_v12  ;;  %1426 = vmatprep.subr.mxu1 %v1144_v0 }
 0x11a   :  { %1393 = vmatprep.subr.mxu0 %v1111_v33  ;;  %1427 = vmatpush3.msra.mxu1 %v1128_v1 }
 0x11b   :  { %1394 = vmatpush3.msra.mxu0 %v1095_v34  ;;  %1428 = vmatprep.subr.mxu1 %v1143_v3 }
 0x11c   :  { %1395 = vmatprep.subr.mxu0 %v1110_v35  ;;  %1429 = vmatpush3.msra.mxu1 %v1127_v4 }
 0x11d   :  { %1396 = vmatpush3.msra.mxu0 %v1094_v36  ;;  %1430 = vmatprep.subr.mxu1 %v1142_v5  ;;  %v1294_v5 = vld [vmem:[#allocation6 + $0x20] sm:$0xff] }
 0x11e   :  { %1397 = vmatprep.subr.mxu0 %v1109_v37  ;;  %1431 = vmatpush3.msra.mxu1 %v1126_v6  ;;  %v1293_v6 = vld [vmem:[#allocation6 + $0x18] sm:$0xff] }
 0x11f   :  { %1398 = vmatpush3.msra.mxu0 %v1093_v38  ;;  %1432 = vmatprep.subr.mxu1 %v1141_v7  ;;  %v1292_v7 = vld [vmem:[#allocation6 + $0x10] sm:$0xff] }
 0x120   :  { %1399 = vmatprep.subr.mxu0 %v1108_v39  ;;  %1433 = vmatpush3.msra.mxu1 %v1125_v8  ;;  %v1291_v8 = vld [vmem:[#allocation6 + $0x8] sm:$0xff] }
 0x121   :  { %1400 = vmatpush3.msra.mxu0 %v1092_v40  ;;  %1434 = vmatprep.subr.mxu1 %v1140_v10  ;;  %v1305_v40 = vld [vmem:[#allocation6 + $0x78] sm:$0xff]  ;;  %v1290_v10 = vld [vmem:[#allocation6] sm:$0xff] }
 0x122   :  { %1401 = vmatprep.subr.mxu0 %v1107_v41  ;;  %1435 = vmatpush3.msra.mxu1 %v1124_v13  ;;  %v1304_v41 = vld [vmem:[#allocation6 + $0x70] sm:$0xff] }
 0x123   :  { %1402 = vmatpush3.msra.mxu0 %v1091_v42  ;;  %1436 = vmatprep.subr.mxu1 %v1139_v14  ;;  %v1303_v42 = vld [vmem:[#allocation6 + $0x68] sm:$0xff] }
 0x124   :  { %1403 = vmatprep.subr.mxu0 %v1106_v43  ;;  %1437 = vmatpush3.msra.mxu1 %v1123_v15  ;;  %v1302_v43 = vld [vmem:[#allocation6 + $0x60] sm:$0xff] }
 0x125   :  { %1404 = vmatpush3.msra.mxu0 %v1090_v44  ;;  %1438 = vmatprep.subr.mxu1 %v1138_v16  ;;  %v1301_v44 = vld [vmem:[#allocation6 + $0x58] sm:$0xff] }
 0x126   :  { %1405 = vmatprep.subr.mxu0 %v1105_v45  ;;  %1439 = vmatpush3.msra.mxu1 %v1122_v17  ;;  %v1300_v45 = vld [vmem:[#allocation6 + $0x50] sm:$0xff] }
 0x127   :  { %1406 = vmatpush3.msra.mxu0 %v1089_v46  ;;  %1440 = vmatprep.subr.mxu1 %v1137_v18  ;;  %v1299_v46 = vld [vmem:[#allocation6 + $0x48] sm:$0xff] }
 0x128   :  { %1407 = vmatprep.subr.mxu0 %v1104_v47  ;;  %1441 = vmatpush3.msra.mxu1 %v1121_v19  ;;  %v1298_v47 = vld [vmem:[#allocation6 + $0x40] sm:$0xff] }
 0x129   :  { %1408 = vmatpush3.msra.mxu0 %v1088_v48  ;;  %1442 = vmatprep.subr.mxu1 %v1136_v20  ;;  %v579_v28 = vpop.f32.mrf.mxu0  ;;  %v1297_v48 = vld [vmem:[#allocation6 + $0x38] sm:$0xff] }
 0x12a   :  { %1409 = vmatprep.subr.mxu0 %v1103_v49  ;;  %1443 = vmatpush3.msra.mxu1 %v1120_v21  ;;  %v650_v29 = vpop.f32.mrf.mxu1  ;;  %v1296_v49 = vld [vmem:[#allocation6 + $0x30] sm:$0xff] }
 0x12b   :  { %1410 = vmatpush3.msra.mxu0 %v1087_v50  ;;  %1444 = vmatprep.subr.mxu1 %v1135_v22  ;;  %v581_v63 = vpop.f32.mrf.mxu0  ;;  %v651_v2 = vadd.f32 %v650_v29, %v579_v28 }
 0x12c   :  { %1411 = vmatprep.subr.mxu0 %v1102_v51  ;;  %1445 = vmatpush3.msra.mxu1 %v1119_v23  ;;  %v652_v30 = vpop.f32.mrf.mxu1 }
 0x12d   :  { %1412 = vmatpush3.msra.mxu0 %v1086_v52  ;;  %1446 = vmatprep.subr.mxu1 %v1134_v24  ;;  %v653_v32 = vadd.f32 %v652_v30, %v581_v63  ;;  %v1295_v52 = vld [vmem:[#allocation6 + $0x28] sm:$0xff] }
 0x12e   :  { %1413 = vmatprep.subr.mxu0 %v1101_v53  ;;  %1447 = vmatpush3.msra.mxu1 %v1118_v25 }
 0x12f   :  { %1414 = vmatpush3.msra.mxu0 %v1085_v54  ;;  %1448 = vmatprep.subr.mxu1 %v1133_v26 }
 0x130   :  { %1470 = vmatprep.subr.mxu0 %v1588_v11  ;;  %1449 = vmatpush3.msra.mxu1 %v1117_v27 }
 0x14b   :  { %v792_v9 = vpop.f32.mrf.mxu1 }
 0x14d   :  { %v794_v35 = vpop.f32.mrf.mxu1 }
 0x16c   :  { %v721_v31 = vpop.f32.mrf.mxu0 }
 0x16d   :  { %v722_v12 = vadd.f32 %v721_v31, %v651_v2 }
 0x16e   :  { %v723_v33 = vpop.f32.mrf.mxu0 }
 0x16f   :  { %v724_v34 = vadd.f32 %v723_v33, %v653_v32  ;;  %v793_v36 = vadd.f32 %v792_v9, %v722_v12 }
 0x171   :  { %v795_v37 = vadd.f32 %v794_v35, %v724_v34  ;;  %v1081_v39 = vmul.f32 %v793_v36, %v793_v36 }
 0x173   :  { %v1082_v38 = vmul.f32 %v795_v37, %v795_v37 }
 0x175   :  { %1213 = vmatprep.mubr.f32.mxu0 %v1082_v38 }
 0x176   :  { %1214 = vmatmul.mubr.f32.vlgmr.msra.gmra.mxu0 %v1081_v39 }
 0x177   :  { %1471 = vmatpush3.msra.mxu0 %v1305_v40  ;;  %1502 = vmatprep.mubr.msk.f32.mxu0 %vm1589_vm0, %v1588_v11 }
 0x178   :  { %1472 = vmatprep.subr.mxu0 %v1588_v11 }
 0x179   :  { %1473 = vmatpush3.msra.mxu0 %v1304_v41 }
 0x17a   :  { %1474 = vmatprep.subr.mxu0 %v1588_v11 }
 0x17b   :  { %1475 = vmatpush3.msra.mxu0 %v1303_v42 }
 0x17c   :  { %1476 = vmatprep.subr.mxu0 %v1588_v11 }
 0x17d   :  { %1477 = vmatpush3.msra.mxu0 %v1302_v43 }
 0x17e   :  { %1478 = vmatprep.subr.mxu0 %v1588_v11 }
 0x17f   :  { %1479 = vmatpush3.msra.mxu0 %v1301_v44 }
 0x180   :  { %1480 = vmatprep.subr.mxu0 %v1588_v11 }
 0x181   :  { %1481 = vmatpush3.msra.mxu0 %v1300_v45 }
 0x182   :  { %1482 = vmatprep.subr.mxu0 %v1588_v11 }
 0x183   :  { %1483 = vmatpush3.msra.mxu0 %v1299_v46 }
 0x184   :  { %1484 = vmatprep.subr.mxu0 %v1588_v11 }
 0x185   :  { %1485 = vmatpush3.msra.mxu0 %v1298_v47 }
 0x186   :  { %1486 = vmatprep.subr.mxu0 %v1588_v11 }
 0x187   :  { %1487 = vmatpush3.msra.mxu0 %v1297_v48 }
 0x188   :  { %1488 = vmatprep.subr.mxu0 %v1588_v11 }
 0x189   :  { %1489 = vmatpush3.msra.mxu0 %v1296_v49 }
 0x18a   :  { %1490 = vmatprep.subr.mxu0 %v1588_v11 }
 0x18b   :  { %1491 = vmatpush3.msra.mxu0 %v1295_v52 }
 0x18c   :  { %1492 = vmatprep.subr.mxu0 %v1588_v11 }
 0x18d   :  { %v863_v50 = vpop.f32.mrf.mxu1  ;;  %1493 = vmatpush3.msra.mxu0 %v1294_v5 }
 0x18e   :  { %1494 = vmatprep.subr.mxu0 %v1588_v11 }
 0x18f   :  { %v865_v53 = vpop.f32.mrf.mxu1  ;;  %1495 = vmatpush3.msra.mxu0 %v1293_v6 }
 0x190   :  { %1496 = vmatprep.subr.mxu0 %v1588_v11 }
 0x191   :  { %1497 = vmatpush3.msra.mxu0 %v1292_v7 }
 0x192   :  { %1498 = vmatprep.subr.mxu0 %v1588_v11 }
 0x193   :  { %1499 = vmatpush3.msra.mxu0 %v1291_v8 }
 0x194   :  { %1500 = vmatprep.subr.mxu0 %v1588_v11 }
 0x195   :  { %1501 = vmatpush3.msra.mxu0 %v1290_v10 }
 0x1ae   :  { %v934_v51 = vpop.f32.mrf.mxu0 }
 0x1af   :  { %v935_v55 = vadd.f32 %v934_v51, %v863_v50 }
 0x1b0   :  { %v936_v54 = vpop.f32.mrf.mxu0 }
 0x1b1   :  { %v937_v58 = vadd.f32 %v936_v54, %v865_v53 }
 0x1cf   :  { %v1005_v56 = vpop.f32.mrf.mxu1 }
 0x1d0   :  { %v1076_v57 = vpop.f32.mrf.mxu0  ;;  %v1006_v59 = vadd.f32 %v1005_v56, %v935_v55 }
 0x1d1   :  { %v1007_v60 = vpop.f32.mrf.mxu1 }
 0x1d2   :  { %v1008_v61 = vadd.f32 %v1007_v60, %v937_v58  ;;  %v1077_v62 = vadd.f32 %v1076_v57, %v1006_v59  ;;  %v1078_v0 = vpop.f32.mrf.mxu0 }
 0x1d4   :  { %v1079_v1 = vadd.f32 %v1078_v0, %v1008_v61  ;;  %v1083_v4 = vmul.f32 %v1077_v62, %v1077_v62 }
 0x1d6   :  { %v1084_v3 = vmul.f32 %v1079_v1, %v1079_v1 }
 0x1d8   :  { %1283 = vmatprep.mubr.f32.mxu1 %v1084_v3 }
 0x1d9   :  { %1284 = vmatmul.mubr.f32.vlgmr.msra.gmra.mxu1 %v1083_v4 }
 0x236   :  { %v1415_v13 = vpop.f32.mrf.mxu0 }
 0x238   :  { %v1416_v14 = vpop.f32.mrf.mxu0 }
 0x239   :  { %v1417_v17 = vadd.f32 %v1416_v14, %v1415_v13 }
 0x299   :  { %v1450_v15 = vpop.f32.mrf.mxu1 }
 0x29b   :  { %v1451_v16 = vpop.f32.mrf.mxu1 }
 0x29c   :  { %v1452_v18 = vadd.f32 %v1451_v16, %v1450_v15 }
 0x29e   :  { %v1286_v19 = vadd.f32 %v1452_v18, %v1417_v17 }
 0x2a0   :  { %v1289_v20 = vmul.f32 %v1286_v19, %v1286_v19 }
 0x2a2   :  { %1503 = vmatmul.mubr.f32.vlgmr.msra.gmra.mxu0 %v1289_v20 }
 0x362   :  { %v1372_v21 = vpop.f32.mrf.mxu0 }
 0x363   :  { %1376 = vst [vmem:[%s1696_s4] sm:$0xff] %v1372_v21 }
 0x364   :  { %v1504_v22 = vpop.f32.mrf.mxu0 }
 0x365   :  { %1381 = vsyncpa [#allocation3], 1 }
 0x366   :  { %1382 = vsyncpa [#allocation5], 1 }

</bundles_post_ra>
